<compile_context>
chip_gen: v5e
topology: v5e:2x2
jax: 0.10.0
libtpu: 0.0.40
codegen_flags: <defaults>
</compile_context>

<pallas_src>
from functools import partial

import jax
import jax.numpy as jnp
from jax.experimental import pallas as pl
from jax.experimental.pallas import tpu as pltpu


# --------------------------------------------------------------------------- #
# Kernel
# --------------------------------------------------------------------------- #
def din_kernel(q_ref, hist_ref, mask_ref,
               map_wt_ref, map_bt_ref,
               wqd_ref, wud_ref, wp_ref, a_b1_ref,
               a_w2_ref, a_b2_ref, a_w3_ref, a_b3_ref,
               m_w1a_ref, m_w1b_ref, m_b1_ref,
               m_w2_ref, m_b2_ref, f_w_ref, f_b_ref,
               out_ref):
    f32 = jnp.float32
    q = q_ref[...].astype(f32)                 # (Di, TB)   batch on lanes
    L = hist_ref.shape[0]
    Di, TB = q.shape

    # Query-dependent part of the attention MLP's first layer, computed once
    # per batch row (not per timestep); bias b1 folded in here.
    s_q = jnp.dot(wqd_ref[...], q, preferred_element_type=f32) + a_b1_ref[...]  # (H1, TB)

    # Streaming attention-weighted sum pool over the history timesteps.
    # TODO(synk): for very large max_hist_len switch this static unroll to a
    # lax.fori_loop carrying `ui`.
    ui = jnp.zeros((Di, TB), f32)
    for l in range(L):
        h_l = hist_ref[l].astype(f32)                                   # (Dh, TB)
        # map_layer: Linear(Dh -> Di) per timestep
        ub_l = (jnp.dot(map_wt_ref[...], h_l, preferred_element_type=f32)
                + map_bt_ref[...])                                      # (Di, TB)
        # attention MLP (concat folded into split weights)
        z1 = (s_q
              + jnp.dot(wud_ref[...], ub_l, preferred_element_type=f32)
              + jnp.dot(wp_ref[...], q * ub_l, preferred_element_type=f32))
        a1 = jnp.maximum(z1, 0.0)                                       # (H1, TB)
        a2 = jnp.maximum(jnp.dot(a_w2_ref[...], a1,
                                 preferred_element_type=f32)
                         + a_b2_ref[...], 0.0)                          # (H2, TB)
        # N=1 projection on VPU/XLU (not the MXU)
        score = (jnp.sum(a2 * a_w3_ref[...], axis=0, keepdims=True)
                 + a_b3_ref[...])                                       # (1, TB)
        attn = score * mask_ref[l]                                      # (1, TB)
        ui = ui + ub_l * attn                                           # (Di, TB)

    # final MLP; concat([user_interest, query]) folded into split row blocks.
    m1 = jnp.maximum(jnp.dot(m_w1a_ref[...], ui, preferred_element_type=f32)
                     + jnp.dot(m_w1b_ref[...], q, preferred_element_type=f32)
                     + m_b1_ref[...], 0.0)                              # (M1, TB)
    m2 = jnp.maximum(jnp.dot(m_w2_ref[...], m1, preferred_element_type=f32)
                     + m_b2_ref[...], 0.0)                              # (M2, TB)
    logits = (jnp.sum(m2 * f_w_ref[...], axis=0, keepdims=True)
              + f_b_ref[...])                                           # (1, TB)
    out_ref[...] = jax.nn.sigmoid(logits)


# --------------------------------------------------------------------------- #
# Wrapper
# --------------------------------------------------------------------------- #
@partial(jax.jit, static_argnames=("tb",))
def din_forward(query, hist_emb, mask, p, *, tb=128):
    B, L, Dh = hist_emb.shape
    Di = query.shape[1]
    H1 = p["a_w1"].shape[1]
    H2 = p["a_w2"].shape[1]
    M1 = p["m_w1"].shape[1]
    M2 = p["m_w2"].shape[1]

    # ---- pad batch to a multiple of the tile -------------------------------
    G = (B + tb - 1) // tb
    Bp = G * tb
    pad = Bp - B
    q_p = jnp.pad(query, ((0, pad), (0, 0)))
    h_p = jnp.pad(hist_emb, ((0, pad), (0, 0), (0, 0)))
    m_p = jnp.pad(mask, ((0, pad), (0, 0)))

    # ---- feature-major / time-leading layouts (batch on the lane axis) -----
    # TODO(synk): in production the embedding-gather glue should emit these
    # layouts (and bf16) directly instead of transposing/casting here.
    q_t = q_p.T.astype(jnp.bfloat16)                              # (Di, Bp)
    h_t = jnp.transpose(h_p, (1, 2, 0)).astype(jnp.bfloat16)      # (L, Dh, Bp)
    m_t = m_p.T[:, None, :].astype(jnp.float32)                   # (L, 1, Bp)

    # ---- fold the concats into split / transposed weights (trace time) -----
    Wq, Wu, Wd, Wprod = jnp.split(p["a_w1"], 4, axis=0)           # (Di, H1) each
    W1a, W1b = jnp.split(p["m_w1"], 2, axis=0)                    # (Di, M1) each
    weights = (
        p["map_w"].T, p["map_b"].reshape(-1, 1),
        (Wq + Wd).T, (Wu - Wd).T, Wprod.T, p["a_b1"].reshape(-1, 1),
        p["a_w2"].T, p["a_b2"].reshape(-1, 1),
        p["a_w3"], p["a_b3"].reshape(-1, 1),
        W1a.T, W1b.T, p["m_b1"].reshape(-1, 1),
        p["m_w2"].T, p["m_b2"].reshape(-1, 1),
        p["f_w"], p["f_b"].reshape(-1, 1),
    )
    weights = tuple(w.astype(jnp.float32) for w in weights)

    def const_spec(w):
        nd = w.ndim
        return pl.BlockSpec(w.shape, lambda i: (0,) * nd)   # VMEM-resident

    in_specs = [
        pl.BlockSpec((Di, tb), lambda i: (0, i)),            # query.T
        pl.BlockSpec((L, Dh, tb), lambda i: (0, 0, i)),      # hist (time-major)
        pl.BlockSpec((L, 1, tb), lambda i: (0, 0, i)),       # mask
    ] + [const_spec(w) for w in weights]

    flops = int(2 * Bp * L * (Dh * Di + 2 * Di * H1 + H1 * H2 + H2 + Di)
                + 2 * Bp * (Di * H1 + 2 * Di * M1 + M1 * M2 + M2))
    bytes_accessed = int(h_t.size * 2 + q_t.size * 2 + m_t.size * 4
                         + sum(int(w.size) * 4 for w in weights) + Bp * 4)

    out = pl.pallas_call(
        din_kernel,
        grid=(G,),
        in_specs=in_specs,
        out_specs=pl.BlockSpec((None, 1, tb), lambda i: (i, 0, 0)),
        out_shape=jax.ShapeDtypeStruct((G, 1, tb), jnp.float32),
        compiler_params=pltpu.CompilerParams(
            dimension_semantics=("parallel",),
            vmem_limit_bytes=32 * 1024 * 1024,
        ),
        cost_estimate=pl.CostEstimate(
            flops=flops, transcendentals=int(Bp),
            bytes_accessed=bytes_accessed),
    )(q_t, h_t, m_t, *weights)

    return out.reshape(Bp)[:B].reshape(B, 1)


# --------------------------------------------------------------------------- #
# Pure-JAX reference mirroring the PyTorch forward (eval mode)
# --------------------------------------------------------------------------- #
def din_reference(query, hist_emb, mask, p):
    B, L, Dh = hist_emb.shape
    Di = query.shape[1]
    ub = hist_emb.reshape(B * L, Dh) @ p["map_w"] + p["map_b"]
    ub = ub.reshape(B, L, Di)
    qe = jnp.broadcast_to(query[:, None, :], (B, L, Di))
    ai = jnp.concatenate([qe, ub, qe - ub, qe * ub], -1).reshape(B * L, 4 * Di)
    a = jnp.maximum(ai @ p["a_w1"] + p["a_b1"], 0.0)
    a = jnp.maximum(a @ p["a_w2"] + p["a_b2"], 0.0)
    attns = (a @ p["a_w3"] + p["a_b3"]).reshape(B, L) * mask
    ui = jnp.sum(ub * attns[:, :, None], axis=1)
    c = jnp.concatenate([ui, query], -1)
    m = jnp.maximum(c @ p["m_w1"] + p["m_b1"], 0.0)
    m = jnp.maximum(m @ p["m_w2"] + p["m_b2"], 0.0)
    logits = m @ p["f_w"] + p["f_b"]
    return jax.nn.sigmoid(logits)


if __name__ == "__main__":
    # ---- small config consistent with the module ---------------------------
    B, L, E, attr_fnum = 2, 8, 8, 2          # batch, max_hist_len, embed_dim
    item_num, attr_num, rating_num = 50, 20, 5
    item_fnum = 1 + attr_fnum                # 3
    hist_fnum = 2 + attr_fnum                # 4
    Di = item_fnum * E                       # itm_emb_dim = 24
    Dh = hist_fnum * E                       # hist_emb_dim = 32
    attn_hidden = (32, 16)                   # AttentionPoolingLayer fc_dims
    final_mlp_arch = (32, 16)

    key = jax.random.PRNGKey(0)
    ks = jax.random.split(key, 24)

    # ---- embedding tables (deterministic synthetic params) -----------------
    item_tbl = 0.1 * jax.random.normal(ks[0], (item_num + 1, E), jnp.float32)
    attr_tbl = 0.1 * jax.random.normal(ks[1], (attr_num + 1, E), jnp.float32)
    rate_tbl = 0.1 * jax.random.normal(ks[2], (rating_num + 1, E), jnp.float32)

    # ---- synthetic raw inputs ----------------------------------------------
    hist_iid = jax.random.randint(ks[3], (B, L), 0, item_num + 1)
    hist_aid = jax.random.randint(ks[4], (B, L, attr_fnum), 0, attr_num + 1)
    hist_rate = jax.random.randint(ks[5], (B, L), 0, rating_num + 1)
    iid = jax.random.randint(ks[6], (B,), 0, item_num + 1)
    aid = jax.random.randint(ks[7], (B, attr_fnum), 0, attr_num + 1)
    hist_len = jnp.array([5, 8], dtype=jnp.int32)

    # ---- process_input glue (embedding gathers, concat) --------------------
    hist_item_emb = item_tbl[hist_iid]                               # (B,L,E)
    hist_attr_emb = attr_tbl[hist_aid].reshape(B, L, attr_fnum * E)  # (B,L,2E)
    hist_rate_emb = rate_tbl[hist_rate]                              # (B,L,E)
    hist_emb = jnp.concatenate(
        [hist_item_emb, hist_attr_emb, hist_rate_emb], axis=-1)      # (B,L,Dh)
    query = jnp.concatenate(
        [item_tbl[iid], attr_tbl[aid].reshape(B, attr_fnum * E)], -1)  # (B,Di)
    mask = (jnp.arange(L)[None, :] < hist_len[:, None]).astype(jnp.float32)

    # ---- model parameters (deterministic) -----------------------------------
    def lin(k, din, dout, scale=0.1):
        kw, kb = jax.random.split(k)
        return (scale * jax.random.normal(kw, (din, dout), jnp.float32),
                scale * jax.random.normal(kb, (1, dout), jnp.float32))

    params = {}
    params["map_w"], params["map_b"] = lin(ks[8], Dh, Di)
    params["a_w1"], params["a_b1"] = lin(ks[9], 4 * Di, attn_hidden[0])
    params["a_w2"], params["a_b2"] = lin(ks[10], attn_hidden[0], attn_hidden[1])
    params["a_w3"], params["a_b3"] = lin(ks[11], attn_hidden[1], 1)
    params["m_w1"], params["m_b1"] = lin(ks[12], 2 * Di, final_mlp_arch[0])
    params["m_w2"], params["m_b2"] = lin(ks[13], final_mlp_arch[0], final_mlp_arch[1])
    params["f_w"], params["f_b"] = lin(ks[14], final_mlp_arch[1], 1)

    # ---- run kernel + check against pure-JAX reference ----------------------
    out = din_forward(query, hist_emb, mask, params)
    out = jax.block_until_ready(out)

    # The kernel quantizes hist/query to bf16 on the HBM side; feed identically
    # quantized inputs to the f32 reference so the comparison isolates the
    # kernel math (small residual comes from matmul pass decomposition).
    hist_q = hist_emb.astype(jnp.bfloat16).astype(jnp.float32)
    query_q = query.astype(jnp.bfloat16).astype(jnp.float32)
    ref = din_reference(query_q, hist_q, mask, params)

    assert out.shape == (B, 1)
    assert jnp.allclose(out, ref, atol=2e-3, rtol=2e-3), (out, ref)
    # TODO(synk): training-only pieces (dropout, BCEWithLogitsLoss) are not part
    # of the inference hot path and are intentionally omitted.
    print("KERNEL_OK")
</pallas_src>

<mosaic_0001>
module attributes {stable_mosaic.version = 11 : i64} {
  func.func @din_kernel(%arg0: i32, %arg1: memref<24x128xbf16, #tpu.memory_space<vmem>>, %arg2: memref<8x32x128xbf16, #tpu.memory_space<vmem>>, %arg3: memref<8x1x128xf32, #tpu.memory_space<vmem>>, %arg4: memref<24x32xf32, #tpu.memory_space<vmem>>, %arg5: memref<24x1xf32, #tpu.memory_space<vmem>>, %arg6: memref<32x24xf32, #tpu.memory_space<vmem>>, %arg7: memref<32x24xf32, #tpu.memory_space<vmem>>, %arg8: memref<32x24xf32, #tpu.memory_space<vmem>>, %arg9: memref<32x1xf32, #tpu.memory_space<vmem>>, %arg10: memref<16x32xf32, #tpu.memory_space<vmem>>, %arg11: memref<16x1xf32, #tpu.memory_space<vmem>>, %arg12: memref<16x1xf32, #tpu.memory_space<vmem>>, %arg13: memref<1x1xf32, #tpu.memory_space<vmem>>, %arg14: memref<32x24xf32, #tpu.memory_space<vmem>>, %arg15: memref<32x24xf32, #tpu.memory_space<vmem>>, %arg16: memref<32x1xf32, #tpu.memory_space<vmem>>, %arg17: memref<16x32xf32, #tpu.memory_space<vmem>>, %arg18: memref<16x1xf32, #tpu.memory_space<vmem>>, %arg19: memref<16x1xf32, #tpu.memory_space<vmem>>, %arg20: memref<1x1xf32, #tpu.memory_space<vmem>>, %arg21: memref<1x1x128xf32, #tpu.memory_space<vmem>>) attributes {dimension_semantics = [#tpu.dimension_semantics<parallel>], iteration_bounds = array<i64: 1>, scalar_prefetch = 0 : i64, scratch_operands = 0 : i64, tpu.core_type = #tpu.core_type<tc>, window_params = [{transform_indices = @transform_0, window_bounds = array<i64: 24, 128>}, {transform_indices = @transform_1, window_bounds = array<i64: 8, 32, 128>}, {transform_indices = @transform_2, window_bounds = array<i64: 8, 1, 128>}, {pipeline_mode = #tpu.pipeline_mode<synchronous>, transform_indices = @transform_3, window_bounds = array<i64: 24, 32>}, {pipeline_mode = #tpu.pipeline_mode<synchronous>, transform_indices = @transform_4, window_bounds = array<i64: 24, 1>}, {pipeline_mode = #tpu.pipeline_mode<synchronous>, transform_indices = @transform_5, window_bounds = array<i64: 32, 24>}, {pipeline_mode = #tpu.pipeline_mode<synchronous>, transform_indices = @transform_6, window_bounds = array<i64: 32, 24>}, {pipeline_mode = #tpu.pipeline_mode<synchronous>, transform_indices = @transform_7, window_bounds = array<i64: 32, 24>}, {pipeline_mode = #tpu.pipeline_mode<synchronous>, transform_indices = @transform_8, window_bounds = array<i64: 32, 1>}, {pipeline_mode = #tpu.pipeline_mode<synchronous>, transform_indices = @transform_9, window_bounds = array<i64: 16, 32>}, {pipeline_mode = #tpu.pipeline_mode<synchronous>, transform_indices = @transform_10, window_bounds = array<i64: 16, 1>}, {pipeline_mode = #tpu.pipeline_mode<synchronous>, transform_indices = @transform_11, window_bounds = array<i64: 16, 1>}, {pipeline_mode = #tpu.pipeline_mode<synchronous>, transform_indices = @transform_12, window_bounds = array<i64: 1, 1>}, {pipeline_mode = #tpu.pipeline_mode<synchronous>, transform_indices = @transform_13, window_bounds = array<i64: 32, 24>}, {pipeline_mode = #tpu.pipeline_mode<synchronous>, transform_indices = @transform_14, window_bounds = array<i64: 32, 24>}, {pipeline_mode = #tpu.pipeline_mode<synchronous>, transform_indices = @transform_15, window_bounds = array<i64: 32, 1>}, {pipeline_mode = #tpu.pipeline_mode<synchronous>, transform_indices = @transform_16, window_bounds = array<i64: 16, 32>}, {pipeline_mode = #tpu.pipeline_mode<synchronous>, transform_indices = @transform_17, window_bounds = array<i64: 16, 1>}, {pipeline_mode = #tpu.pipeline_mode<synchronous>, transform_indices = @transform_18, window_bounds = array<i64: 16, 1>}, {pipeline_mode = #tpu.pipeline_mode<synchronous>, transform_indices = @transform_19, window_bounds = array<i64: 1, 1>}, {transform_indices = @transform_20, window_bounds = array<i64: 1, 1, 128>}]} {
    %c0 = arith.constant 0 : index
    %c0_0 = arith.constant 0 : index
    %0 = vector.load %arg1[%c0, %c0_0] : memref<24x128xbf16, #tpu.memory_space<vmem>>, vector<24x128xbf16>
    %1 = arith.extf %0 : vector<24x128xbf16> to vector<24x128xf32>
    %c0_1 = arith.constant 0 : index
    %c0_2 = arith.constant 0 : index
    %2 = vector.load %arg6[%c0_1, %c0_2] : memref<32x24xf32, #tpu.memory_space<vmem>>, vector<32x24xf32>
    %cst = arith.constant dense<0.000000e+00> : vector<32x128xf32>
    %3 = tpu.matmul %2, %1, %cst {dimension_numbers = #tpu.dot_dimension_numbers<[1], [0], [0], [1], [0, 0, 1, 1], [], []>} : vector<32x24xf32>, vector<24x128xf32>, vector<32x128xf32> -> vector<32x128xf32>
    %c0_3 = arith.constant 0 : index
    %c0_4 = arith.constant 0 : index
    %4 = vector.load %arg9[%c0_3, %c0_4] : memref<32x1xf32, #tpu.memory_space<vmem>>, vector<32x1xf32>
    %5 = vector.broadcast %4 : vector<32x1xf32> to vector<32x128xf32>
    %6 = arith.addf %3, %5 : vector<32x128xf32>
    %cst_5 = arith.constant 0.000000e+00 : f32
    %7 = vector.broadcast %cst_5 : f32 to vector<24x128xf32>
    %c0_6 = arith.constant 0 : index
    %c0_7 = arith.constant 0 : index
    %c0_8 = arith.constant 0 : index
    %8 = vector.load %arg2[%c0_6, %c0_7, %c0_8] : memref<8x32x128xbf16, #tpu.memory_space<vmem>>, vector<1x32x128xbf16>
    %9 = vector.shape_cast %8 : vector<1x32x128xbf16> to vector<32x128xbf16>
    %10 = arith.extf %9 : vector<32x128xbf16> to vector<32x128xf32>
    %c0_9 = arith.constant 0 : index
    %c0_10 = arith.constant 0 : index
    %11 = vector.load %arg4[%c0_9, %c0_10] : memref<24x32xf32, #tpu.memory_space<vmem>>, vector<24x32xf32>
    %cst_11 = arith.constant dense<0.000000e+00> : vector<24x128xf32>
    %12 = tpu.matmul %11, %10, %cst_11 {dimension_numbers = #tpu.dot_dimension_numbers<[1], [0], [0], [1], [0, 0, 1, 1], [], []>} : vector<24x32xf32>, vector<32x128xf32>, vector<24x128xf32> -> vector<24x128xf32>
    %c0_12 = arith.constant 0 : index
    %c0_13 = arith.constant 0 : index
    %13 = vector.load %arg5[%c0_12, %c0_13] : memref<24x1xf32, #tpu.memory_space<vmem>>, vector<24x1xf32>
    %14 = vector.broadcast %13 : vector<24x1xf32> to vector<24x128xf32>
    %15 = arith.addf %12, %14 : vector<24x128xf32>
    %c0_14 = arith.constant 0 : index
    %c0_15 = arith.constant 0 : index
    %16 = vector.load %arg7[%c0_14, %c0_15] : memref<32x24xf32, #tpu.memory_space<vmem>>, vector<32x24xf32>
    %cst_16 = arith.constant dense<0.000000e+00> : vector<32x128xf32>
    %17 = tpu.matmul %16, %15, %cst_16 {dimension_numbers = #tpu.dot_dimension_numbers<[1], [0], [0], [1], [0, 0, 1, 1], [], []>} : vector<32x24xf32>, vector<24x128xf32>, vector<32x128xf32> -> vector<32x128xf32>
    %18 = arith.addf %6, %17 : vector<32x128xf32>
    %c0_17 = arith.constant 0 : index
    %c0_18 = arith.constant 0 : index
    %19 = vector.load %arg8[%c0_17, %c0_18] : memref<32x24xf32, #tpu.memory_space<vmem>>, vector<32x24xf32>
    %20 = arith.mulf %1, %15 : vector<24x128xf32>
    %cst_19 = arith.constant dense<0.000000e+00> : vector<32x128xf32>
    %21 = tpu.matmul %19, %20, %cst_19 {dimension_numbers = #tpu.dot_dimension_numbers<[1], [0], [0], [1], [0, 0, 1, 1], [], []>} : vector<32x24xf32>, vector<24x128xf32>, vector<32x128xf32> -> vector<32x128xf32>
    %22 = arith.addf %18, %21 : vector<32x128xf32>
    %cst_20 = arith.constant 0.000000e+00 : f32
    %23 = vector.broadcast %cst_20 : f32 to vector<32x128xf32>
    %24 = arith.maximumf %22, %23 : vector<32x128xf32>
    %c0_21 = arith.constant 0 : index
    %c0_22 = arith.constant 0 : index
    %25 = vector.load %arg10[%c0_21, %c0_22] : memref<16x32xf32, #tpu.memory_space<vmem>>, vector<16x32xf32>
    %cst_23 = arith.constant dense<0.000000e+00> : vector<16x128xf32>
    %26 = tpu.matmul %25, %24, %cst_23 {dimension_numbers = #tpu.dot_dimension_numbers<[1], [0], [0], [1], [0, 0, 1, 1], [], []>} : vector<16x32xf32>, vector<32x128xf32>, vector<16x128xf32> -> vector<16x128xf32>
    %c0_24 = arith.constant 0 : index
    %c0_25 = arith.constant 0 : index
    %27 = vector.load %arg11[%c0_24, %c0_25] : memref<16x1xf32, #tpu.memory_space<vmem>>, vector<16x1xf32>
    %28 = vector.broadcast %27 : vector<16x1xf32> to vector<16x128xf32>
    %29 = arith.addf %26, %28 : vector<16x128xf32>
    %cst_26 = arith.constant 0.000000e+00 : f32
    %30 = vector.broadcast %cst_26 : f32 to vector<16x128xf32>
    %31 = arith.maximumf %29, %30 : vector<16x128xf32>
    %c0_27 = arith.constant 0 : index
    %c0_28 = arith.constant 0 : index
    %32 = vector.load %arg12[%c0_27, %c0_28] : memref<16x1xf32, #tpu.memory_space<vmem>>, vector<16x1xf32>
    %33 = vector.broadcast %32 : vector<16x1xf32> to vector<16x128xf32>
    %34 = arith.mulf %31, %33 : vector<16x128xf32>
    %cst_29 = arith.constant dense<0.000000e+00> : vector<128xf32>
    %35 = vector.multi_reduction <add>, %34, %cst_29 [0] : vector<16x128xf32> to vector<128xf32>
    %36 = vector.shape_cast %35 : vector<128xf32> to vector<1x128xf32>
    %c0_30 = arith.constant 0 : index
    %c0_31 = arith.constant 0 : index
    %37 = vector.load %arg13[%c0_30, %c0_31] : memref<1x1xf32, #tpu.memory_space<vmem>>, vector<1x1xf32>
    %38 = vector.broadcast %37 : vector<1x1xf32> to vector<1x128xf32>
    %39 = arith.addf %36, %38 : vector<1x128xf32>
    %c0_32 = arith.constant 0 : index
    %c0_33 = arith.constant 0 : index
    %c0_34 = arith.constant 0 : index
    %40 = vector.load %arg3[%c0_32, %c0_33, %c0_34] : memref<8x1x128xf32, #tpu.memory_space<vmem>>, vector<1x1x128xf32>
    %41 = vector.shape_cast %40 : vector<1x1x128xf32> to vector<1x128xf32>
    %42 = arith.mulf %39, %41 : vector<1x128xf32>
    %43 = vector.broadcast %42 : vector<1x128xf32> to vector<24x128xf32>
    %44 = arith.mulf %15, %43 : vector<24x128xf32>
    %45 = arith.addf %7, %44 : vector<24x128xf32>
    %c1 = arith.constant 1 : index
    %c0_35 = arith.constant 0 : index
    %c0_36 = arith.constant 0 : index
    %46 = vector.load %arg2[%c1, %c0_35, %c0_36] : memref<8x32x128xbf16, #tpu.memory_space<vmem>>, vector<1x32x128xbf16>
    %47 = vector.shape_cast %46 : vector<1x32x128xbf16> to vector<32x128xbf16>
    %48 = arith.extf %47 : vector<32x128xbf16> to vector<32x128xf32>
    %c0_37 = arith.constant 0 : index
    %c0_38 = arith.constant 0 : index
    %49 = vector.load %arg4[%c0_37, %c0_38] : memref<24x32xf32, #tpu.memory_space<vmem>>, vector<24x32xf32>
    %cst_39 = arith.constant dense<0.000000e+00> : vector<24x128xf32>
    %50 = tpu.matmul %49, %48, %cst_39 {dimension_numbers = #tpu.dot_dimension_numbers<[1], [0], [0], [1], [0, 0, 1, 1], [], []>} : vector<24x32xf32>, vector<32x128xf32>, vector<24x128xf32> -> vector<24x128xf32>
    %c0_40 = arith.constant 0 : index
    %c0_41 = arith.constant 0 : index
    %51 = vector.load %arg5[%c0_40, %c0_41] : memref<24x1xf32, #tpu.memory_space<vmem>>, vector<24x1xf32>
    %52 = vector.broadcast %51 : vector<24x1xf32> to vector<24x128xf32>
    %53 = arith.addf %50, %52 : vector<24x128xf32>
    %c0_42 = arith.constant 0 : index
    %c0_43 = arith.constant 0 : index
    %54 = vector.load %arg7[%c0_42, %c0_43] : memref<32x24xf32, #tpu.memory_space<vmem>>, vector<32x24xf32>
    %cst_44 = arith.constant dense<0.000000e+00> : vector<32x128xf32>
    %55 = tpu.matmul %54, %53, %cst_44 {dimension_numbers = #tpu.dot_dimension_numbers<[1], [0], [0], [1], [0, 0, 1, 1], [], []>} : vector<32x24xf32>, vector<24x128xf32>, vector<32x128xf32> -> vector<32x128xf32>
    %56 = arith.addf %6, %55 : vector<32x128xf32>
    %c0_45 = arith.constant 0 : index
    %c0_46 = arith.constant 0 : index
    %57 = vector.load %arg8[%c0_45, %c0_46] : memref<32x24xf32, #tpu.memory_space<vmem>>, vector<32x24xf32>
    %58 = arith.mulf %1, %53 : vector<24x128xf32>
    %cst_47 = arith.constant dense<0.000000e+00> : vector<32x128xf32>
    %59 = tpu.matmul %57, %58, %cst_47 {dimension_numbers = #tpu.dot_dimension_numbers<[1], [0], [0], [1], [0, 0, 1, 1], [], []>} : vector<32x24xf32>, vector<24x128xf32>, vector<32x128xf32> -> vector<32x128xf32>
    %60 = arith.addf %56, %59 : vector<32x128xf32>
    %cst_48 = arith.constant 0.000000e+00 : f32
    %61 = vector.broadcast %cst_48 : f32 to vector<32x128xf32>
    %62 = arith.maximumf %60, %61 : vector<32x128xf32>
    %c0_49 = arith.constant 0 : index
    %c0_50 = arith.constant 0 : index
    %63 = vector.load %arg10[%c0_49, %c0_50] : memref<16x32xf32, #tpu.memory_space<vmem>>, vector<16x32xf32>
    %cst_51 = arith.constant dense<0.000000e+00> : vector<16x128xf32>
    %64 = tpu.matmul %63, %62, %cst_51 {dimension_numbers = #tpu.dot_dimension_numbers<[1], [0], [0], [1], [0, 0, 1, 1], [], []>} : vector<16x32xf32>, vector<32x128xf32>, vector<16x128xf32> -> vector<16x128xf32>
    %c0_52 = arith.constant 0 : index
    %c0_53 = arith.constant 0 : index
    %65 = vector.load %arg11[%c0_52, %c0_53] : memref<16x1xf32, #tpu.memory_space<vmem>>, vector<16x1xf32>
    %66 = vector.broadcast %65 : vector<16x1xf32> to vector<16x128xf32>
    %67 = arith.addf %64, %66 : vector<16x128xf32>
    %cst_54 = arith.constant 0.000000e+00 : f32
    %68 = vector.broadcast %cst_54 : f32 to vector<16x128xf32>
    %69 = arith.maximumf %67, %68 : vector<16x128xf32>
    %c0_55 = arith.constant 0 : index
    %c0_56 = arith.constant 0 : index
    %70 = vector.load %arg12[%c0_55, %c0_56] : memref<16x1xf32, #tpu.memory_space<vmem>>, vector<16x1xf32>
    %71 = vector.broadcast %70 : vector<16x1xf32> to vector<16x128xf32>
    %72 = arith.mulf %69, %71 : vector<16x128xf32>
    %cst_57 = arith.constant dense<0.000000e+00> : vector<128xf32>
    %73 = vector.multi_reduction <add>, %72, %cst_57 [0] : vector<16x128xf32> to vector<128xf32>
    %74 = vector.shape_cast %73 : vector<128xf32> to vector<1x128xf32>
    %c0_58 = arith.constant 0 : index
    %c0_59 = arith.constant 0 : index
    %75 = vector.load %arg13[%c0_58, %c0_59] : memref<1x1xf32, #tpu.memory_space<vmem>>, vector<1x1xf32>
    %76 = vector.broadcast %75 : vector<1x1xf32> to vector<1x128xf32>
    %77 = arith.addf %74, %76 : vector<1x128xf32>
    %c1_60 = arith.constant 1 : index
    %c0_61 = arith.constant 0 : index
    %c0_62 = arith.constant 0 : index
    %78 = vector.load %arg3[%c1_60, %c0_61, %c0_62] : memref<8x1x128xf32, #tpu.memory_space<vmem>>, vector<1x1x128xf32>
    %79 = vector.shape_cast %78 : vector<1x1x128xf32> to vector<1x128xf32>
    %80 = arith.mulf %77, %79 : vector<1x128xf32>
    %81 = vector.broadcast %80 : vector<1x128xf32> to vector<24x128xf32>
    %82 = arith.mulf %53, %81 : vector<24x128xf32>
    %83 = arith.addf %45, %82 : vector<24x128xf32>
    %c2 = arith.constant 2 : index
    %c0_63 = arith.constant 0 : index
    %c0_64 = arith.constant 0 : index
    %84 = vector.load %arg2[%c2, %c0_63, %c0_64] : memref<8x32x128xbf16, #tpu.memory_space<vmem>>, vector<1x32x128xbf16>
    %85 = vector.shape_cast %84 : vector<1x32x128xbf16> to vector<32x128xbf16>
    %86 = arith.extf %85 : vector<32x128xbf16> to vector<32x128xf32>
    %c0_65 = arith.constant 0 : index
    %c0_66 = arith.constant 0 : index
    %87 = vector.load %arg4[%c0_65, %c0_66] : memref<24x32xf32, #tpu.memory_space<vmem>>, vector<24x32xf32>
    %cst_67 = arith.constant dense<0.000000e+00> : vector<24x128xf32>
    %88 = tpu.matmul %87, %86, %cst_67 {dimension_numbers = #tpu.dot_dimension_numbers<[1], [0], [0], [1], [0, 0, 1, 1], [], []>} : vector<24x32xf32>, vector<32x128xf32>, vector<24x128xf32> -> vector<24x128xf32>
    %c0_68 = arith.constant 0 : index
    %c0_69 = arith.constant 0 : index
    %89 = vector.load %arg5[%c0_68, %c0_69] : memref<24x1xf32, #tpu.memory_space<vmem>>, vector<24x1xf32>
    %90 = vector.broadcast %89 : vector<24x1xf32> to vector<24x128xf32>
    %91 = arith.addf %88, %90 : vector<24x128xf32>
    %c0_70 = arith.constant 0 : index
    %c0_71 = arith.constant 0 : index
    %92 = vector.load %arg7[%c0_70, %c0_71] : memref<32x24xf32, #tpu.memory_space<vmem>>, vector<32x24xf32>
    %cst_72 = arith.constant dense<0.000000e+00> : vector<32x128xf32>
    %93 = tpu.matmul %92, %91, %cst_72 {dimension_numbers = #tpu.dot_dimension_numbers<[1], [0], [0], [1], [0, 0, 1, 1], [], []>} : vector<32x24xf32>, vector<24x128xf32>, vector<32x128xf32> -> vector<32x128xf32>
    %94 = arith.addf %6, %93 : vector<32x128xf32>
    %c0_73 = arith.constant 0 : index
    %c0_74 = arith.constant 0 : index
    %95 = vector.load %arg8[%c0_73, %c0_74] : memref<32x24xf32, #tpu.memory_space<vmem>>, vector<32x24xf32>
    %96 = arith.mulf %1, %91 : vector<24x128xf32>
    %cst_75 = arith.constant dense<0.000000e+00> : vector<32x128xf32>
    %97 = tpu.matmul %95, %96, %cst_75 {dimension_numbers = #tpu.dot_dimension_numbers<[1], [0], [0], [1], [0, 0, 1, 1], [], []>} : vector<32x24xf32>, vector<24x128xf32>, vector<32x128xf32> -> vector<32x128xf32>
    %98 = arith.addf %94, %97 : vector<32x128xf32>
    %cst_76 = arith.constant 0.000000e+00 : f32
    %99 = vector.broadcast %cst_76 : f32 to vector<32x128xf32>
    %100 = arith.maximumf %98, %99 : vector<32x128xf32>
    %c0_77 = arith.constant 0 : index
    %c0_78 = arith.constant 0 : index
    %101 = vector.load %arg10[%c0_77, %c0_78] : memref<16x32xf32, #tpu.memory_space<vmem>>, vector<16x32xf32>
    %cst_79 = arith.constant dense<0.000000e+00> : vector<16x128xf32>
    %102 = tpu.matmul %101, %100, %cst_79 {dimension_numbers = #tpu.dot_dimension_numbers<[1], [0], [0], [1], [0, 0, 1, 1], [], []>} : vector<16x32xf32>, vector<32x128xf32>, vector<16x128xf32> -> vector<16x128xf32>
    %c0_80 = arith.constant 0 : index
    %c0_81 = arith.constant 0 : index
    %103 = vector.load %arg11[%c0_80, %c0_81] : memref<16x1xf32, #tpu.memory_space<vmem>>, vector<16x1xf32>
    %104 = vector.broadcast %103 : vector<16x1xf32> to vector<16x128xf32>
    %105 = arith.addf %102, %104 : vector<16x128xf32>
    %cst_82 = arith.constant 0.000000e+00 : f32
    %106 = vector.broadcast %cst_82 : f32 to vector<16x128xf32>
    %107 = arith.maximumf %105, %106 : vector<16x128xf32>
    %c0_83 = arith.constant 0 : index
    %c0_84 = arith.constant 0 : index
    %108 = vector.load %arg12[%c0_83, %c0_84] : memref<16x1xf32, #tpu.memory_space<vmem>>, vector<16x1xf32>
    %109 = vector.broadcast %108 : vector<16x1xf32> to vector<16x128xf32>
    %110 = arith.mulf %107, %109 : vector<16x128xf32>
    %cst_85 = arith.constant dense<0.000000e+00> : vector<128xf32>
    %111 = vector.multi_reduction <add>, %110, %cst_85 [0] : vector<16x128xf32> to vector<128xf32>
    %112 = vector.shape_cast %111 : vector<128xf32> to vector<1x128xf32>
    %c0_86 = arith.constant 0 : index
    %c0_87 = arith.constant 0 : index
    %113 = vector.load %arg13[%c0_86, %c0_87] : memref<1x1xf32, #tpu.memory_space<vmem>>, vector<1x1xf32>
    %114 = vector.broadcast %113 : vector<1x1xf32> to vector<1x128xf32>
    %115 = arith.addf %112, %114 : vector<1x128xf32>
    %c2_88 = arith.constant 2 : index
    %c0_89 = arith.constant 0 : index
    %c0_90 = arith.constant 0 : index
    %116 = vector.load %arg3[%c2_88, %c0_89, %c0_90] : memref<8x1x128xf32, #tpu.memory_space<vmem>>, vector<1x1x128xf32>
    %117 = vector.shape_cast %116 : vector<1x1x128xf32> to vector<1x128xf32>
    %118 = arith.mulf %115, %117 : vector<1x128xf32>
    %119 = vector.broadcast %118 : vector<1x128xf32> to vector<24x128xf32>
    %120 = arith.mulf %91, %119 : vector<24x128xf32>
    %121 = arith.addf %83, %120 : vector<24x128xf32>
    %c3 = arith.constant 3 : index
    %c0_91 = arith.constant 0 : index
    %c0_92 = arith.constant 0 : index
    %122 = vector.load %arg2[%c3, %c0_91, %c0_92] : memref<8x32x128xbf16, #tpu.memory_space<vmem>>, vector<1x32x128xbf16>
    %123 = vector.shape_cast %122 : vector<1x32x128xbf16> to vector<32x128xbf16>
    %124 = arith.extf %123 : vector<32x128xbf16> to vector<32x128xf32>
    %c0_93 = arith.constant 0 : index
    %c0_94 = arith.constant 0 : index
    %125 = vector.load %arg4[%c0_93, %c0_94] : memref<24x32xf32, #tpu.memory_space<vmem>>, vector<24x32xf32>
    %cst_95 = arith.constant dense<0.000000e+00> : vector<24x128xf32>
    %126 = tpu.matmul %125, %124, %cst_95 {dimension_numbers = #tpu.dot_dimension_numbers<[1], [0], [0], [1], [0, 0, 1, 1], [], []>} : vector<24x32xf32>, vector<32x128xf32>, vector<24x128xf32> -> vector<24x128xf32>
    %c0_96 = arith.constant 0 : index
    %c0_97 = arith.constant 0 : index
    %127 = vector.load %arg5[%c0_96, %c0_97] : memref<24x1xf32, #tpu.memory_space<vmem>>, vector<24x1xf32>
    %128 = vector.broadcast %127 : vector<24x1xf32> to vector<24x128xf32>
    %129 = arith.addf %126, %128 : vector<24x128xf32>
    %c0_98 = arith.constant 0 : index
    %c0_99 = arith.constant 0 : index
    %130 = vector.load %arg7[%c0_98, %c0_99] : memref<32x24xf32, #tpu.memory_space<vmem>>, vector<32x24xf32>
    %cst_100 = arith.constant dense<0.000000e+00> : vector<32x128xf32>
    %131 = tpu.matmul %130, %129, %cst_100 {dimension_numbers = #tpu.dot_dimension_numbers<[1], [0], [0], [1], [0, 0, 1, 1], [], []>} : vector<32x24xf32>, vector<24x128xf32>, vector<32x128xf32> -> vector<32x128xf32>
    %132 = arith.addf %6, %131 : vector<32x128xf32>
    %c0_101 = arith.constant 0 : index
    %c0_102 = arith.constant 0 : index
    %133 = vector.load %arg8[%c0_101, %c0_102] : memref<32x24xf32, #tpu.memory_space<vmem>>, vector<32x24xf32>
    %134 = arith.mulf %1, %129 : vector<24x128xf32>
    %cst_103 = arith.constant dense<0.000000e+00> : vector<32x128xf32>
    %135 = tpu.matmul %133, %134, %cst_103 {dimension_numbers = #tpu.dot_dimension_numbers<[1], [0], [0], [1], [0, 0, 1, 1], [], []>} : vector<32x24xf32>, vector<24x128xf32>, vector<32x128xf32> -> vector<32x128xf32>
    %136 = arith.addf %132, %135 : vector<32x128xf32>
    %cst_104 = arith.constant 0.000000e+00 : f32
    %137 = vector.broadcast %cst_104 : f32 to vector<32x128xf32>
    %138 = arith.maximumf %136, %137 : vector<32x128xf32>
    %c0_105 = arith.constant 0 : index
    %c0_106 = arith.constant 0 : index
    %139 = vector.load %arg10[%c0_105, %c0_106] : memref<16x32xf32, #tpu.memory_space<vmem>>, vector<16x32xf32>
    %cst_107 = arith.constant dense<0.000000e+00> : vector<16x128xf32>
    %140 = tpu.matmul %139, %138, %cst_107 {dimension_numbers = #tpu.dot_dimension_numbers<[1], [0], [0], [1], [0, 0, 1, 1], [], []>} : vector<16x32xf32>, vector<32x128xf32>, vector<16x128xf32> -> vector<16x128xf32>
    %c0_108 = arith.constant 0 : index
    %c0_109 = arith.constant 0 : index
    %141 = vector.load %arg11[%c0_108, %c0_109] : memref<16x1xf32, #tpu.memory_space<vmem>>, vector<16x1xf32>
    %142 = vector.broadcast %141 : vector<16x1xf32> to vector<16x128xf32>
    %143 = arith.addf %140, %142 : vector<16x128xf32>
    %cst_110 = arith.constant 0.000000e+00 : f32
    %144 = vector.broadcast %cst_110 : f32 to vector<16x128xf32>
    %145 = arith.maximumf %143, %144 : vector<16x128xf32>
    %c0_111 = arith.constant 0 : index
    %c0_112 = arith.constant 0 : index
    %146 = vector.load %arg12[%c0_111, %c0_112] : memref<16x1xf32, #tpu.memory_space<vmem>>, vector<16x1xf32>
    %147 = vector.broadcast %146 : vector<16x1xf32> to vector<16x128xf32>
    %148 = arith.mulf %145, %147 : vector<16x128xf32>
    %cst_113 = arith.constant dense<0.000000e+00> : vector<128xf32>
    %149 = vector.multi_reduction <add>, %148, %cst_113 [0] : vector<16x128xf32> to vector<128xf32>
    %150 = vector.shape_cast %149 : vector<128xf32> to vector<1x128xf32>
    %c0_114 = arith.constant 0 : index
    %c0_115 = arith.constant 0 : index
    %151 = vector.load %arg13[%c0_114, %c0_115] : memref<1x1xf32, #tpu.memory_space<vmem>>, vector<1x1xf32>
    %152 = vector.broadcast %151 : vector<1x1xf32> to vector<1x128xf32>
    %153 = arith.addf %150, %152 : vector<1x128xf32>
    %c3_116 = arith.constant 3 : index
    %c0_117 = arith.constant 0 : index
    %c0_118 = arith.constant 0 : index
    %154 = vector.load %arg3[%c3_116, %c0_117, %c0_118] : memref<8x1x128xf32, #tpu.memory_space<vmem>>, vector<1x1x128xf32>
    %155 = vector.shape_cast %154 : vector<1x1x128xf32> to vector<1x128xf32>
    %156 = arith.mulf %153, %155 : vector<1x128xf32>
    %157 = vector.broadcast %156 : vector<1x128xf32> to vector<24x128xf32>
    %158 = arith.mulf %129, %157 : vector<24x128xf32>
    %159 = arith.addf %121, %158 : vector<24x128xf32>
    %c4 = arith.constant 4 : index
    %c0_119 = arith.constant 0 : index
    %c0_120 = arith.constant 0 : index
    %160 = vector.load %arg2[%c4, %c0_119, %c0_120] : memref<8x32x128xbf16, #tpu.memory_space<vmem>>, vector<1x32x128xbf16>
    %161 = vector.shape_cast %160 : vector<1x32x128xbf16> to vector<32x128xbf16>
    %162 = arith.extf %161 : vector<32x128xbf16> to vector<32x128xf32>
    %c0_121 = arith.constant 0 : index
    %c0_122 = arith.constant 0 : index
    %163 = vector.load %arg4[%c0_121, %c0_122] : memref<24x32xf32, #tpu.memory_space<vmem>>, vector<24x32xf32>
    %cst_123 = arith.constant dense<0.000000e+00> : vector<24x128xf32>
    %164 = tpu.matmul %163, %162, %cst_123 {dimension_numbers = #tpu.dot_dimension_numbers<[1], [0], [0], [1], [0, 0, 1, 1], [], []>} : vector<24x32xf32>, vector<32x128xf32>, vector<24x128xf32> -> vector<24x128xf32>
    %c0_124 = arith.constant 0 : index
    %c0_125 = arith.constant 0 : index
    %165 = vector.load %arg5[%c0_124, %c0_125] : memref<24x1xf32, #tpu.memory_space<vmem>>, vector<24x1xf32>
    %166 = vector.broadcast %165 : vector<24x1xf32> to vector<24x128xf32>
    %167 = arith.addf %164, %166 : vector<24x128xf32>
    %c0_126 = arith.constant 0 : index
    %c0_127 = arith.constant 0 : index
    %168 = vector.load %arg7[%c0_126, %c0_127] : memref<32x24xf32, #tpu.memory_space<vmem>>, vector<32x24xf32>
    %cst_128 = arith.constant dense<0.000000e+00> : vector<32x128xf32>
    %169 = tpu.matmul %168, %167, %cst_128 {dimension_numbers = #tpu.dot_dimension_numbers<[1], [0], [0], [1], [0, 0, 1, 1], [], []>} : vector<32x24xf32>, vector<24x128xf32>, vector<32x128xf32> -> vector<32x128xf32>
    %170 = arith.addf %6, %169 : vector<32x128xf32>
    %c0_129 = arith.constant 0 : index
    %c0_130 = arith.constant 0 : index
    %171 = vector.load %arg8[%c0_129, %c0_130] : memref<32x24xf32, #tpu.memory_space<vmem>>, vector<32x24xf32>
    %172 = arith.mulf %1, %167 : vector<24x128xf32>
    %cst_131 = arith.constant dense<0.000000e+00> : vector<32x128xf32>
    %173 = tpu.matmul %171, %172, %cst_131 {dimension_numbers = #tpu.dot_dimension_numbers<[1], [0], [0], [1], [0, 0, 1, 1], [], []>} : vector<32x24xf32>, vector<24x128xf32>, vector<32x128xf32> -> vector<32x128xf32>
    %174 = arith.addf %170, %173 : vector<32x128xf32>
    %cst_132 = arith.constant 0.000000e+00 : f32
    %175 = vector.broadcast %cst_132 : f32 to vector<32x128xf32>
    %176 = arith.maximumf %174, %175 : vector<32x128xf32>
    %c0_133 = arith.constant 0 : index
    %c0_134 = arith.constant 0 : index
    %177 = vector.load %arg10[%c0_133, %c0_134] : memref<16x32xf32, #tpu.memory_space<vmem>>, vector<16x32xf32>
    %cst_135 = arith.constant dense<0.000000e+00> : vector<16x128xf32>
    %178 = tpu.matmul %177, %176, %cst_135 {dimension_numbers = #tpu.dot_dimension_numbers<[1], [0], [0], [1], [0, 0, 1, 1], [], []>} : vector<16x32xf32>, vector<32x128xf32>, vector<16x128xf32> -> vector<16x128xf32>
    %c0_136 = arith.constant 0 : index
    %c0_137 = arith.constant 0 : index
    %179 = vector.load %arg11[%c0_136, %c0_137] : memref<16x1xf32, #tpu.memory_space<vmem>>, vector<16x1xf32>
    %180 = vector.broadcast %179 : vector<16x1xf32> to vector<16x128xf32>
    %181 = arith.addf %178, %180 : vector<16x128xf32>
    %cst_138 = arith.constant 0.000000e+00 : f32
    %182 = vector.broadcast %cst_138 : f32 to vector<16x128xf32>
    %183 = arith.maximumf %181, %182 : vector<16x128xf32>
    %c0_139 = arith.constant 0 : index
    %c0_140 = arith.constant 0 : index
    %184 = vector.load %arg12[%c0_139, %c0_140] : memref<16x1xf32, #tpu.memory_space<vmem>>, vector<16x1xf32>
    %185 = vector.broadcast %184 : vector<16x1xf32> to vector<16x128xf32>
    %186 = arith.mulf %183, %185 : vector<16x128xf32>
    %cst_141 = arith.constant dense<0.000000e+00> : vector<128xf32>
    %187 = vector.multi_reduction <add>, %186, %cst_141 [0] : vector<16x128xf32> to vector<128xf32>
    %188 = vector.shape_cast %187 : vector<128xf32> to vector<1x128xf32>
    %c0_142 = arith.constant 0 : index
    %c0_143 = arith.constant 0 : index
    %189 = vector.load %arg13[%c0_142, %c0_143] : memref<1x1xf32, #tpu.memory_space<vmem>>, vector<1x1xf32>
    %190 = vector.broadcast %189 : vector<1x1xf32> to vector<1x128xf32>
    %191 = arith.addf %188, %190 : vector<1x128xf32>
    %c4_144 = arith.constant 4 : index
    %c0_145 = arith.constant 0 : index
    %c0_146 = arith.constant 0 : index
    %192 = vector.load %arg3[%c4_144, %c0_145, %c0_146] : memref<8x1x128xf32, #tpu.memory_space<vmem>>, vector<1x1x128xf32>
    %193 = vector.shape_cast %192 : vector<1x1x128xf32> to vector<1x128xf32>
    %194 = arith.mulf %191, %193 : vector<1x128xf32>
    %195 = vector.broadcast %194 : vector<1x128xf32> to vector<24x128xf32>
    %196 = arith.mulf %167, %195 : vector<24x128xf32>
    %197 = arith.addf %159, %196 : vector<24x128xf32>
    %c5 = arith.constant 5 : index
    %c0_147 = arith.constant 0 : index
    %c0_148 = arith.constant 0 : index
    %198 = vector.load %arg2[%c5, %c0_147, %c0_148] : memref<8x32x128xbf16, #tpu.memory_space<vmem>>, vector<1x32x128xbf16>
    %199 = vector.shape_cast %198 : vector<1x32x128xbf16> to vector<32x128xbf16>
    %200 = arith.extf %199 : vector<32x128xbf16> to vector<32x128xf32>
    %c0_149 = arith.constant 0 : index
    %c0_150 = arith.constant 0 : index
    %201 = vector.load %arg4[%c0_149, %c0_150] : memref<24x32xf32, #tpu.memory_space<vmem>>, vector<24x32xf32>
    %cst_151 = arith.constant dense<0.000000e+00> : vector<24x128xf32>
    %202 = tpu.matmul %201, %200, %cst_151 {dimension_numbers = #tpu.dot_dimension_numbers<[1], [0], [0], [1], [0, 0, 1, 1], [], []>} : vector<24x32xf32>, vector<32x128xf32>, vector<24x128xf32> -> vector<24x128xf32>
    %c0_152 = arith.constant 0 : index
    %c0_153 = arith.constant 0 : index
    %203 = vector.load %arg5[%c0_152, %c0_153] : memref<24x1xf32, #tpu.memory_space<vmem>>, vector<24x1xf32>
    %204 = vector.broadcast %203 : vector<24x1xf32> to vector<24x128xf32>
    %205 = arith.addf %202, %204 : vector<24x128xf32>
    %c0_154 = arith.constant 0 : index
    %c0_155 = arith.constant 0 : index
    %206 = vector.load %arg7[%c0_154, %c0_155] : memref<32x24xf32, #tpu.memory_space<vmem>>, vector<32x24xf32>
    %cst_156 = arith.constant dense<0.000000e+00> : vector<32x128xf32>
    %207 = tpu.matmul %206, %205, %cst_156 {dimension_numbers = #tpu.dot_dimension_numbers<[1], [0], [0], [1], [0, 0, 1, 1], [], []>} : vector<32x24xf32>, vector<24x128xf32>, vector<32x128xf32> -> vector<32x128xf32>
    %208 = arith.addf %6, %207 : vector<32x128xf32>
    %c0_157 = arith.constant 0 : index
    %c0_158 = arith.constant 0 : index
    %209 = vector.load %arg8[%c0_157, %c0_158] : memref<32x24xf32, #tpu.memory_space<vmem>>, vector<32x24xf32>
    %210 = arith.mulf %1, %205 : vector<24x128xf32>
    %cst_159 = arith.constant dense<0.000000e+00> : vector<32x128xf32>
    %211 = tpu.matmul %209, %210, %cst_159 {dimension_numbers = #tpu.dot_dimension_numbers<[1], [0], [0], [1], [0, 0, 1, 1], [], []>} : vector<32x24xf32>, vector<24x128xf32>, vector<32x128xf32> -> vector<32x128xf32>
    %212 = arith.addf %208, %211 : vector<32x128xf32>
    %cst_160 = arith.constant 0.000000e+00 : f32
    %213 = vector.broadcast %cst_160 : f32 to vector<32x128xf32>
    %214 = arith.maximumf %212, %213 : vector<32x128xf32>
    %c0_161 = arith.constant 0 : index
    %c0_162 = arith.constant 0 : index
    %215 = vector.load %arg10[%c0_161, %c0_162] : memref<16x32xf32, #tpu.memory_space<vmem>>, vector<16x32xf32>
    %cst_163 = arith.constant dense<0.000000e+00> : vector<16x128xf32>
    %216 = tpu.matmul %215, %214, %cst_163 {dimension_numbers = #tpu.dot_dimension_numbers<[1], [0], [0], [1], [0, 0, 1, 1], [], []>} : vector<16x32xf32>, vector<32x128xf32>, vector<16x128xf32> -> vector<16x128xf32>
    %c0_164 = arith.constant 0 : index
    %c0_165 = arith.constant 0 : index
    %217 = vector.load %arg11[%c0_164, %c0_165] : memref<16x1xf32, #tpu.memory_space<vmem>>, vector<16x1xf32>
    %218 = vector.broadcast %217 : vector<16x1xf32> to vector<16x128xf32>
    %219 = arith.addf %216, %218 : vector<16x128xf32>
    %cst_166 = arith.constant 0.000000e+00 : f32
    %220 = vector.broadcast %cst_166 : f32 to vector<16x128xf32>
    %221 = arith.maximumf %219, %220 : vector<16x128xf32>
    %c0_167 = arith.constant 0 : index
    %c0_168 = arith.constant 0 : index
    %222 = vector.load %arg12[%c0_167, %c0_168] : memref<16x1xf32, #tpu.memory_space<vmem>>, vector<16x1xf32>
    %223 = vector.broadcast %222 : vector<16x1xf32> to vector<16x128xf32>
    %224 = arith.mulf %221, %223 : vector<16x128xf32>
    %cst_169 = arith.constant dense<0.000000e+00> : vector<128xf32>
    %225 = vector.multi_reduction <add>, %224, %cst_169 [0] : vector<16x128xf32> to vector<128xf32>
    %226 = vector.shape_cast %225 : vector<128xf32> to vector<1x128xf32>
    %c0_170 = arith.constant 0 : index
    %c0_171 = arith.constant 0 : index
    %227 = vector.load %arg13[%c0_170, %c0_171] : memref<1x1xf32, #tpu.memory_space<vmem>>, vector<1x1xf32>
    %228 = vector.broadcast %227 : vector<1x1xf32> to vector<1x128xf32>
    %229 = arith.addf %226, %228 : vector<1x128xf32>
    %c5_172 = arith.constant 5 : index
    %c0_173 = arith.constant 0 : index
    %c0_174 = arith.constant 0 : index
    %230 = vector.load %arg3[%c5_172, %c0_173, %c0_174] : memref<8x1x128xf32, #tpu.memory_space<vmem>>, vector<1x1x128xf32>
    %231 = vector.shape_cast %230 : vector<1x1x128xf32> to vector<1x128xf32>
    %232 = arith.mulf %229, %231 : vector<1x128xf32>
    %233 = vector.broadcast %232 : vector<1x128xf32> to vector<24x128xf32>
    %234 = arith.mulf %205, %233 : vector<24x128xf32>
    %235 = arith.addf %197, %234 : vector<24x128xf32>
    %c6 = arith.constant 6 : index
    %c0_175 = arith.constant 0 : index
    %c0_176 = arith.constant 0 : index
    %236 = vector.load %arg2[%c6, %c0_175, %c0_176] : memref<8x32x128xbf16, #tpu.memory_space<vmem>>, vector<1x32x128xbf16>
    %237 = vector.shape_cast %236 : vector<1x32x128xbf16> to vector<32x128xbf16>
    %238 = arith.extf %237 : vector<32x128xbf16> to vector<32x128xf32>
    %c0_177 = arith.constant 0 : index
    %c0_178 = arith.constant 0 : index
    %239 = vector.load %arg4[%c0_177, %c0_178] : memref<24x32xf32, #tpu.memory_space<vmem>>, vector<24x32xf32>
    %cst_179 = arith.constant dense<0.000000e+00> : vector<24x128xf32>
    %240 = tpu.matmul %239, %238, %cst_179 {dimension_numbers = #tpu.dot_dimension_numbers<[1], [0], [0], [1], [0, 0, 1, 1], [], []>} : vector<24x32xf32>, vector<32x128xf32>, vector<24x128xf32> -> vector<24x128xf32>
    %c0_180 = arith.constant 0 : index
    %c0_181 = arith.constant 0 : index
    %241 = vector.load %arg5[%c0_180, %c0_181] : memref<24x1xf32, #tpu.memory_space<vmem>>, vector<24x1xf32>
    %242 = vector.broadcast %241 : vector<24x1xf32> to vector<24x128xf32>
    %243 = arith.addf %240, %242 : vector<24x128xf32>
    %c0_182 = arith.constant 0 : index
    %c0_183 = arith.constant 0 : index
    %244 = vector.load %arg7[%c0_182, %c0_183] : memref<32x24xf32, #tpu.memory_space<vmem>>, vector<32x24xf32>
    %cst_184 = arith.constant dense<0.000000e+00> : vector<32x128xf32>
    %245 = tpu.matmul %244, %243, %cst_184 {dimension_numbers = #tpu.dot_dimension_numbers<[1], [0], [0], [1], [0, 0, 1, 1], [], []>} : vector<32x24xf32>, vector<24x128xf32>, vector<32x128xf32> -> vector<32x128xf32>
    %246 = arith.addf %6, %245 : vector<32x128xf32>
    %c0_185 = arith.constant 0 : index
    %c0_186 = arith.constant 0 : index
    %247 = vector.load %arg8[%c0_185, %c0_186] : memref<32x24xf32, #tpu.memory_space<vmem>>, vector<32x24xf32>
    %248 = arith.mulf %1, %243 : vector<24x128xf32>
    %cst_187 = arith.constant dense<0.000000e+00> : vector<32x128xf32>
    %249 = tpu.matmul %247, %248, %cst_187 {dimension_numbers = #tpu.dot_dimension_numbers<[1], [0], [0], [1], [0, 0, 1, 1], [], []>} : vector<32x24xf32>, vector<24x128xf32>, vector<32x128xf32> -> vector<32x128xf32>
    %250 = arith.addf %246, %249 : vector<32x128xf32>
    %cst_188 = arith.constant 0.000000e+00 : f32
    %251 = vector.broadcast %cst_188 : f32 to vector<32x128xf32>
    %252 = arith.maximumf %250, %251 : vector<32x128xf32>
    %c0_189 = arith.constant 0 : index
    %c0_190 = arith.constant 0 : index
    %253 = vector.load %arg10[%c0_189, %c0_190] : memref<16x32xf32, #tpu.memory_space<vmem>>, vector<16x32xf32>
    %cst_191 = arith.constant dense<0.000000e+00> : vector<16x128xf32>
    %254 = tpu.matmul %253, %252, %cst_191 {dimension_numbers = #tpu.dot_dimension_numbers<[1], [0], [0], [1], [0, 0, 1, 1], [], []>} : vector<16x32xf32>, vector<32x128xf32>, vector<16x128xf32> -> vector<16x128xf32>
    %c0_192 = arith.constant 0 : index
    %c0_193 = arith.constant 0 : index
    %255 = vector.load %arg11[%c0_192, %c0_193] : memref<16x1xf32, #tpu.memory_space<vmem>>, vector<16x1xf32>
    %256 = vector.broadcast %255 : vector<16x1xf32> to vector<16x128xf32>
    %257 = arith.addf %254, %256 : vector<16x128xf32>
    %cst_194 = arith.constant 0.000000e+00 : f32
    %258 = vector.broadcast %cst_194 : f32 to vector<16x128xf32>
    %259 = arith.maximumf %257, %258 : vector<16x128xf32>
    %c0_195 = arith.constant 0 : index
    %c0_196 = arith.constant 0 : index
    %260 = vector.load %arg12[%c0_195, %c0_196] : memref<16x1xf32, #tpu.memory_space<vmem>>, vector<16x1xf32>
    %261 = vector.broadcast %260 : vector<16x1xf32> to vector<16x128xf32>
    %262 = arith.mulf %259, %261 : vector<16x128xf32>
    %cst_197 = arith.constant dense<0.000000e+00> : vector<128xf32>
    %263 = vector.multi_reduction <add>, %262, %cst_197 [0] : vector<16x128xf32> to vector<128xf32>
    %264 = vector.shape_cast %263 : vector<128xf32> to vector<1x128xf32>
    %c0_198 = arith.constant 0 : index
    %c0_199 = arith.constant 0 : index
    %265 = vector.load %arg13[%c0_198, %c0_199] : memref<1x1xf32, #tpu.memory_space<vmem>>, vector<1x1xf32>
    %266 = vector.broadcast %265 : vector<1x1xf32> to vector<1x128xf32>
    %267 = arith.addf %264, %266 : vector<1x128xf32>
    %c6_200 = arith.constant 6 : index
    %c0_201 = arith.constant 0 : index
    %c0_202 = arith.constant 0 : index
    %268 = vector.load %arg3[%c6_200, %c0_201, %c0_202] : memref<8x1x128xf32, #tpu.memory_space<vmem>>, vector<1x1x128xf32>
    %269 = vector.shape_cast %268 : vector<1x1x128xf32> to vector<1x128xf32>
    %270 = arith.mulf %267, %269 : vector<1x128xf32>
    %271 = vector.broadcast %270 : vector<1x128xf32> to vector<24x128xf32>
    %272 = arith.mulf %243, %271 : vector<24x128xf32>
    %273 = arith.addf %235, %272 : vector<24x128xf32>
    %c7 = arith.constant 7 : index
    %c0_203 = arith.constant 0 : index
    %c0_204 = arith.constant 0 : index
    %274 = vector.load %arg2[%c7, %c0_203, %c0_204] : memref<8x32x128xbf16, #tpu.memory_space<vmem>>, vector<1x32x128xbf16>
    %275 = vector.shape_cast %274 : vector<1x32x128xbf16> to vector<32x128xbf16>
    %276 = arith.extf %275 : vector<32x128xbf16> to vector<32x128xf32>
    %c0_205 = arith.constant 0 : index
    %c0_206 = arith.constant 0 : index
    %277 = vector.load %arg4[%c0_205, %c0_206] : memref<24x32xf32, #tpu.memory_space<vmem>>, vector<24x32xf32>
    %cst_207 = arith.constant dense<0.000000e+00> : vector<24x128xf32>
    %278 = tpu.matmul %277, %276, %cst_207 {dimension_numbers = #tpu.dot_dimension_numbers<[1], [0], [0], [1], [0, 0, 1, 1], [], []>} : vector<24x32xf32>, vector<32x128xf32>, vector<24x128xf32> -> vector<24x128xf32>
    %c0_208 = arith.constant 0 : index
    %c0_209 = arith.constant 0 : index
    %279 = vector.load %arg5[%c0_208, %c0_209] : memref<24x1xf32, #tpu.memory_space<vmem>>, vector<24x1xf32>
    %280 = vector.broadcast %279 : vector<24x1xf32> to vector<24x128xf32>
    %281 = arith.addf %278, %280 : vector<24x128xf32>
    %c0_210 = arith.constant 0 : index
    %c0_211 = arith.constant 0 : index
    %282 = vector.load %arg7[%c0_210, %c0_211] : memref<32x24xf32, #tpu.memory_space<vmem>>, vector<32x24xf32>
    %cst_212 = arith.constant dense<0.000000e+00> : vector<32x128xf32>
    %283 = tpu.matmul %282, %281, %cst_212 {dimension_numbers = #tpu.dot_dimension_numbers<[1], [0], [0], [1], [0, 0, 1, 1], [], []>} : vector<32x24xf32>, vector<24x128xf32>, vector<32x128xf32> -> vector<32x128xf32>
    %284 = arith.addf %6, %283 : vector<32x128xf32>
    %c0_213 = arith.constant 0 : index
    %c0_214 = arith.constant 0 : index
    %285 = vector.load %arg8[%c0_213, %c0_214] : memref<32x24xf32, #tpu.memory_space<vmem>>, vector<32x24xf32>
    %286 = arith.mulf %1, %281 : vector<24x128xf32>
    %cst_215 = arith.constant dense<0.000000e+00> : vector<32x128xf32>
    %287 = tpu.matmul %285, %286, %cst_215 {dimension_numbers = #tpu.dot_dimension_numbers<[1], [0], [0], [1], [0, 0, 1, 1], [], []>} : vector<32x24xf32>, vector<24x128xf32>, vector<32x128xf32> -> vector<32x128xf32>
    %288 = arith.addf %284, %287 : vector<32x128xf32>
    %cst_216 = arith.constant 0.000000e+00 : f32
    %289 = vector.broadcast %cst_216 : f32 to vector<32x128xf32>
    %290 = arith.maximumf %288, %289 : vector<32x128xf32>
    %c0_217 = arith.constant 0 : index
    %c0_218 = arith.constant 0 : index
    %291 = vector.load %arg10[%c0_217, %c0_218] : memref<16x32xf32, #tpu.memory_space<vmem>>, vector<16x32xf32>
    %cst_219 = arith.constant dense<0.000000e+00> : vector<16x128xf32>
    %292 = tpu.matmul %291, %290, %cst_219 {dimension_numbers = #tpu.dot_dimension_numbers<[1], [0], [0], [1], [0, 0, 1, 1], [], []>} : vector<16x32xf32>, vector<32x128xf32>, vector<16x128xf32> -> vector<16x128xf32>
    %c0_220 = arith.constant 0 : index
    %c0_221 = arith.constant 0 : index
    %293 = vector.load %arg11[%c0_220, %c0_221] : memref<16x1xf32, #tpu.memory_space<vmem>>, vector<16x1xf32>
    %294 = vector.broadcast %293 : vector<16x1xf32> to vector<16x128xf32>
    %295 = arith.addf %292, %294 : vector<16x128xf32>
    %cst_222 = arith.constant 0.000000e+00 : f32
    %296 = vector.broadcast %cst_222 : f32 to vector<16x128xf32>
    %297 = arith.maximumf %295, %296 : vector<16x128xf32>
    %c0_223 = arith.constant 0 : index
    %c0_224 = arith.constant 0 : index
    %298 = vector.load %arg12[%c0_223, %c0_224] : memref<16x1xf32, #tpu.memory_space<vmem>>, vector<16x1xf32>
    %299 = vector.broadcast %298 : vector<16x1xf32> to vector<16x128xf32>
    %300 = arith.mulf %297, %299 : vector<16x128xf32>
    %cst_225 = arith.constant dense<0.000000e+00> : vector<128xf32>
    %301 = vector.multi_reduction <add>, %300, %cst_225 [0] : vector<16x128xf32> to vector<128xf32>
    %302 = vector.shape_cast %301 : vector<128xf32> to vector<1x128xf32>
    %c0_226 = arith.constant 0 : index
    %c0_227 = arith.constant 0 : index
    %303 = vector.load %arg13[%c0_226, %c0_227] : memref<1x1xf32, #tpu.memory_space<vmem>>, vector<1x1xf32>
    %304 = vector.broadcast %303 : vector<1x1xf32> to vector<1x128xf32>
    %305 = arith.addf %302, %304 : vector<1x128xf32>
    %c7_228 = arith.constant 7 : index
    %c0_229 = arith.constant 0 : index
    %c0_230 = arith.constant 0 : index
    %306 = vector.load %arg3[%c7_228, %c0_229, %c0_230] : memref<8x1x128xf32, #tpu.memory_space<vmem>>, vector<1x1x128xf32>
    %307 = vector.shape_cast %306 : vector<1x1x128xf32> to vector<1x128xf32>
    %308 = arith.mulf %305, %307 : vector<1x128xf32>
    %309 = vector.broadcast %308 : vector<1x128xf32> to vector<24x128xf32>
    %310 = arith.mulf %281, %309 : vector<24x128xf32>
    %311 = arith.addf %273, %310 : vector<24x128xf32>
    %c0_231 = arith.constant 0 : index
    %c0_232 = arith.constant 0 : index
    %312 = vector.load %arg14[%c0_231, %c0_232] : memref<32x24xf32, #tpu.memory_space<vmem>>, vector<32x24xf32>
    %cst_233 = arith.constant dense<0.000000e+00> : vector<32x128xf32>
    %313 = tpu.matmul %312, %311, %cst_233 {dimension_numbers = #tpu.dot_dimension_numbers<[1], [0], [0], [1], [0, 0, 1, 1], [], []>} : vector<32x24xf32>, vector<24x128xf32>, vector<32x128xf32> -> vector<32x128xf32>
    %c0_234 = arith.constant 0 : index
    %c0_235 = arith.constant 0 : index
    %314 = vector.load %arg15[%c0_234, %c0_235] : memref<32x24xf32, #tpu.memory_space<vmem>>, vector<32x24xf32>
    %cst_236 = arith.constant dense<0.000000e+00> : vector<32x128xf32>
    %315 = tpu.matmul %314, %1, %cst_236 {dimension_numbers = #tpu.dot_dimension_numbers<[1], [0], [0], [1], [0, 0, 1, 1], [], []>} : vector<32x24xf32>, vector<24x128xf32>, vector<32x128xf32> -> vector<32x128xf32>
    %316 = arith.addf %313, %315 : vector<32x128xf32>
    %c0_237 = arith.constant 0 : index
    %c0_238 = arith.constant 0 : index
    %317 = vector.load %arg16[%c0_237, %c0_238] : memref<32x1xf32, #tpu.memory_space<vmem>>, vector<32x1xf32>
    %318 = vector.broadcast %317 : vector<32x1xf32> to vector<32x128xf32>
    %319 = arith.addf %316, %318 : vector<32x128xf32>
    %cst_239 = arith.constant 0.000000e+00 : f32
    %320 = vector.broadcast %cst_239 : f32 to vector<32x128xf32>
    %321 = arith.maximumf %319, %320 : vector<32x128xf32>
    %c0_240 = arith.constant 0 : index
    %c0_241 = arith.constant 0 : index
    %322 = vector.load %arg17[%c0_240, %c0_241] : memref<16x32xf32, #tpu.memory_space<vmem>>, vector<16x32xf32>
    %cst_242 = arith.constant dense<0.000000e+00> : vector<16x128xf32>
    %323 = tpu.matmul %322, %321, %cst_242 {dimension_numbers = #tpu.dot_dimension_numbers<[1], [0], [0], [1], [0, 0, 1, 1], [], []>} : vector<16x32xf32>, vector<32x128xf32>, vector<16x128xf32> -> vector<16x128xf32>
    %c0_243 = arith.constant 0 : index
    %c0_244 = arith.constant 0 : index
    %324 = vector.load %arg18[%c0_243, %c0_244] : memref<16x1xf32, #tpu.memory_space<vmem>>, vector<16x1xf32>
    %325 = vector.broadcast %324 : vector<16x1xf32> to vector<16x128xf32>
    %326 = arith.addf %323, %325 : vector<16x128xf32>
    %cst_245 = arith.constant 0.000000e+00 : f32
    %327 = vector.broadcast %cst_245 : f32 to vector<16x128xf32>
    %328 = arith.maximumf %326, %327 : vector<16x128xf32>
    %c0_246 = arith.constant 0 : index
    %c0_247 = arith.constant 0 : index
    %329 = vector.load %arg19[%c0_246, %c0_247] : memref<16x1xf32, #tpu.memory_space<vmem>>, vector<16x1xf32>
    %330 = vector.broadcast %329 : vector<16x1xf32> to vector<16x128xf32>
    %331 = arith.mulf %328, %330 : vector<16x128xf32>
    %cst_248 = arith.constant dense<0.000000e+00> : vector<128xf32>
    %332 = vector.multi_reduction <add>, %331, %cst_248 [0] : vector<16x128xf32> to vector<128xf32>
    %333 = vector.shape_cast %332 : vector<128xf32> to vector<1x128xf32>
    %c0_249 = arith.constant 0 : index
    %c0_250 = arith.constant 0 : index
    %334 = vector.load %arg20[%c0_249, %c0_250] : memref<1x1xf32, #tpu.memory_space<vmem>>, vector<1x1xf32>
    %335 = vector.broadcast %334 : vector<1x1xf32> to vector<1x128xf32>
    %336 = arith.addf %333, %335 : vector<1x128xf32>
    %337 = arith.negf %336 : vector<1x128xf32>
    %338 = math.exp %337 : vector<1x128xf32>
    %cst_251 = arith.constant 1.000000e+00 : f32
    %339 = vector.broadcast %cst_251 : f32 to vector<1x128xf32>
    %340 = arith.addf %339, %338 : vector<1x128xf32>
    %341 = arith.divf %339, %340 : vector<1x128xf32>
    %c0_252 = arith.constant 0 : index
    %c0_253 = arith.constant 0 : index
    %c0_254 = arith.constant 0 : index
    %342 = vector.load %arg21[%c0_252, %c0_253, %c0_254] : memref<1x1x128xf32, #tpu.memory_space<vmem>>, vector<1x1x128xf32>
    %343 = vector.shape_cast %342 : vector<1x1x128xf32> to vector<1x128xf32>
    %344 = vector.shape_cast %341 : vector<1x128xf32> to vector<1x1x128xf32>
    tpu.vector_store %arg21[%c0_252, %c0_253, %c0_254], %344 {strides = array<i32>} : memref<1x1x128xf32, #tpu.memory_space<vmem>>, vector<1x1x128xf32>,
    return
  }
  func.func @transform_0(%arg0: i32) -> (i32, i32) {
    %c0_i32 = arith.constant 0 : i32
    %c0_i32_0 = arith.constant 0 : i32
    return %c0_i32, %arg0 : i32, i32
  }
  func.func @transform_1(%arg0: i32) -> (i32, i32, i32) {
    %c0_i32 = arith.constant 0 : i32
    %c0_i32_0 = arith.constant 0 : i32
    %c0_i32_1 = arith.constant 0 : i32
    return %c0_i32, %c0_i32_0, %arg0 : i32, i32, i32
  }
  func.func @transform_2(%arg0: i32) -> (i32, i32, i32) {
    %c0_i32 = arith.constant 0 : i32
    %c0_i32_0 = arith.constant 0 : i32
    %c0_i32_1 = arith.constant 0 : i32
    return %c0_i32, %c0_i32_0, %arg0 : i32, i32, i32
  }
  func.func @transform_3(%arg0: i32) -> (i32, i32) {
    %c0_i32 = arith.constant 0 : i32
    %c0_i32_0 = arith.constant 0 : i32
    %c0_i32_1 = arith.constant 0 : i32
    return %c0_i32, %c0_i32_0 : i32, i32
  }
  func.func @transform_4(%arg0: i32) -> (i32, i32) {
    %c0_i32 = arith.constant 0 : i32
    %c0_i32_0 = arith.constant 0 : i32
    %c0_i32_1 = arith.constant 0 : i32
    return %c0_i32, %c0_i32_0 : i32, i32
  }
  func.func @transform_5(%arg0: i32) -> (i32, i32) {
    %c0_i32 = arith.constant 0 : i32
    %c0_i32_0 = arith.constant 0 : i32
    %c0_i32_1 = arith.constant 0 : i32
    return %c0_i32, %c0_i32_0 : i32, i32
  }
  func.func @transform_6(%arg0: i32) -> (i32, i32) {
    %c0_i32 = arith.constant 0 : i32
    %c0_i32_0 = arith.constant 0 : i32
    %c0_i32_1 = arith.constant 0 : i32
    return %c0_i32, %c0_i32_0 : i32, i32
  }
  func.func @transform_7(%arg0: i32) -> (i32, i32) {
    %c0_i32 = arith.constant 0 : i32
    %c0_i32_0 = arith.constant 0 : i32
    %c0_i32_1 = arith.constant 0 : i32
    return %c0_i32, %c0_i32_0 : i32, i32
  }
  func.func @transform_8(%arg0: i32) -> (i32, i32) {
    %c0_i32 = arith.constant 0 : i32
    %c0_i32_0 = arith.constant 0 : i32
    %c0_i32_1 = arith.constant 0 : i32
    return %c0_i32, %c0_i32_0 : i32, i32
  }
  func.func @transform_9(%arg0: i32) -> (i32, i32) {
    %c0_i32 = arith.constant 0 : i32
    %c0_i32_0 = arith.constant 0 : i32
    %c0_i32_1 = arith.constant 0 : i32
    return %c0_i32, %c0_i32_0 : i32, i32
  }
  func.func @transform_10(%arg0: i32) -> (i32, i32) {
    %c0_i32 = arith.constant 0 : i32
    %c0_i32_0 = arith.constant 0 : i32
    %c0_i32_1 = arith.constant 0 : i32
    return %c0_i32, %c0_i32_0 : i32, i32
  }
  func.func @transform_11(%arg0: i32) -> (i32, i32) {
    %c0_i32 = arith.constant 0 : i32
    %c0_i32_0 = arith.constant 0 : i32
    %c0_i32_1 = arith.constant 0 : i32
    return %c0_i32, %c0_i32_0 : i32, i32
  }
  func.func @transform_12(%arg0: i32) -> (i32, i32) {
    %c0_i32 = arith.constant 0 : i32
    %c0_i32_0 = arith.constant 0 : i32
    %c0_i32_1 = arith.constant 0 : i32
    return %c0_i32, %c0_i32_0 : i32, i32
  }
  func.func @transform_13(%arg0: i32) -> (i32, i32) {
    %c0_i32 = arith.constant 0 : i32
    %c0_i32_0 = arith.constant 0 : i32
    %c0_i32_1 = arith.constant 0 : i32
    return %c0_i32, %c0_i32_0 : i32, i32
  }
  func.func @transform_14(%arg0: i32) -> (i32, i32) {
    %c0_i32 = arith.constant 0 : i32
    %c0_i32_0 = arith.constant 0 : i32
    %c0_i32_1 = arith.constant 0 : i32
    return %c0_i32, %c0_i32_0 : i32, i32
  }
  func.func @transform_15(%arg0: i32) -> (i32, i32) {
    %c0_i32 = arith.constant 0 : i32
    %c0_i32_0 = arith.constant 0 : i32
    %c0_i32_1 = arith.constant 0 : i32
    return %c0_i32, %c0_i32_0 : i32, i32
  }
  func.func @transform_16(%arg0: i32) -> (i32, i32) {
    %c0_i32 = arith.constant 0 : i32
    %c0_i32_0 = arith.constant 0 : i32
    %c0_i32_1 = arith.constant 0 : i32
    return %c0_i32, %c0_i32_0 : i32, i32
  }
  func.func @transform_17(%arg0: i32) -> (i32, i32) {
    %c0_i32 = arith.constant 0 : i32
    %c0_i32_0 = arith.constant 0 : i32
    %c0_i32_1 = arith.constant 0 : i32
    return %c0_i32, %c0_i32_0 : i32, i32
  }
  func.func @transform_18(%arg0: i32) -> (i32, i32) {
    %c0_i32 = arith.constant 0 : i32
    %c0_i32_0 = arith.constant 0 : i32
    %c0_i32_1 = arith.constant 0 : i32
    return %c0_i32, %c0_i32_0 : i32, i32
  }
  func.func @transform_19(%arg0: i32) -> (i32, i32) {
    %c0_i32 = arith.constant 0 : i32
    %c0_i32_0 = arith.constant 0 : i32
    %c0_i32_1 = arith.constant 0 : i32
    return %c0_i32, %c0_i32_0 : i32, i32
  }
  func.func @transform_20(%arg0: i32) -> (i32, i32, i32) {
    %c0_i32 = arith.constant 0 : i32
    %c0_i32_0 = arith.constant 0 : i32
    %c0_i32_1 = arith.constant 0 : i32
    return %arg0, %c0_i32, %c0_i32_0 : i32, i32, i32
  }
}

</mosaic_0001>

<bundles_post_ra>
// kernel: din_forward.1
= control target key start
LH: loop header
LB: loop body
LE: loop exit
PB: predicated region body
PF: predicated region fallthrough
CT: control target
= control target key end

     0   :  { %v1941_v0 = vmov 0   ;;  %vm103_vm0 = vcmask 195584   ;;  %vm174_vm1 = vcmask 261120   ;;  %s2852_s4 = inlined_call_operand.vmem [shape: f32[24,1], index: 4, kind: input, shape index: {}]   ;;  %s2853_s0 = inlined_call_operand.vmem [shape: bf16[24,128], index: 0, kind: input, shape index: {}]   ;;  %s2854_s1 = inlined_call_operand.vmem [shape: bf16[8,32,128], index: 1, kind: input, shape index: {}]   ;;  %s2855_s5 = inlined_call_operand.vmem [shape: f32[32,24], index: 5, kind: input, shape index: {}]   ;;  %s2856_s8 = inlined_call_operand.vmem [shape: f32[32,1], index: 8, kind: input, shape index: {}]   ;;  %s2857_s3 = inlined_call_operand.vmem [shape: f32[24,32], index: 3, kind: input, shape index: {}]   ;;  %s2858_s10 = inlined_call_operand.vmem [shape: f32[16,1], index: 10, kind: input, shape index: {}]   ;;  %s2859_s11 = inlined_call_operand.vmem [shape: f32[16,1], index: 11, kind: input, shape index: {}]   ;;  %s2860_s15 = inlined_call_operand.vmem [shape: f32[32,1], index: 15, kind: input, shape index: {}]   ;;  %s2861_s17 = inlined_call_operand.vmem [shape: f32[16,1], index: 17, kind: input, shape index: {}]   ;;  %s2862_s18 = inlined_call_operand.vmem [shape: f32[16,1], index: 18, kind: input, shape index: {}]   ;;  %s2863_s6 = inlined_call_operand.vmem [shape: f32[32,24], index: 6, kind: input, shape index: {}]   ;;  %s2864_s7 = inlined_call_operand.vmem [shape: f32[32,24], index: 7, kind: input, shape index: {}]   ;;  %s2865_s12 = inlined_call_operand.<no memory space> [shape: f32[1,1], index: 12, kind: input, shape index: {}]   ;;  %s2866_s19 = inlined_call_operand.<no memory space> [shape: f32[1,1], index: 19, kind: input, shape index: {}]   ;;  %s2867_s9 = inlined_call_operand.vmem [shape: f32[16,32], index: 9, kind: input, shape index: {}]   ;;  %s2868_s2 = inlined_call_operand.vmem [shape: f32[8,1,128], index: 2, kind: input, shape index: {}]   ;;  %s2869_s14 = inlined_call_operand.vmem [shape: f32[32,24], index: 14, kind: input, shape index: {}]   ;;  %s2870_s13 = inlined_call_operand.vmem [shape: f32[32,24], index: 13, kind: input, shape index: {}]   ;;  %s2871_s16 = inlined_call_operand.vmem [shape: f32[16,32], index: 16, kind: input, shape index: {}]   ;;  %s2872_s20 = inlined_call_operand.vmem [shape: f32[1,1,128], index: 20, kind: output, shape index: {}]  }
   0x1   :  { %2880 = sst [smem:[#allocation6_spill]] %s2852_s4  ;;  %1931 = vset.pattern.permute.xlu1 %v1941_v0  ;;  %1930 = vset.pattern.permute.xlu0 %v1941_v0  ;;  %v2093_v19 = vld [vmem:[%s2857_s3] sm:$0xff]  ;;  %v2110_v27 = vld [vmem:[%s2857_s3 + $0x8] sm:$0xff]  ;;  %v2133_v33 = vld [vmem:[%s2857_s3 + $0x10] sm:$0xff] }
   0x2   :  { %2881 = sst [smem:[#allocation7_spill]] %s2853_s0  ;;  %1932 = vset.pattern.permute.xlu2 %v1941_v0  ;;  %v317_v25 = vld [vmem:[%s2858_s10] sm:$0xff]  ;;  %v361_v31 = vld [vmem:[%s2859_s11 + $0x8] sm:$0xff]  ;;  %2890 = vst [vmem:[#allocation4_spill] sm:$0xff] %v2133_v33  ;;  %v1562_v40 = vld [vmem:[%s2860_s15 + $0x18] sm:$0xff] }
   0x3   :  { %2882 = sst [smem:[#allocation8_spill]] %s2854_s1  ;;  %v360_v30 = vld [vmem:[%s2859_s11] sm:$0xff]  ;;  %v1561_v41 = vld [vmem:[%s2860_s15 + $0x10] sm:$0xff]  ;;  %v1637_v46 = vld [vmem:[%s2862_s18 + $0x8] sm:$0xff] }
   0x4   :  { %2883 = sst [smem:[#allocation9_spill]] %s2855_s5  ;;  %v1559_v43 = vld [vmem:[%s2860_s15] sm:$0xff] }
   0x5   :  { %2884 = sst [smem:[#allocation10_spill]] %s2856_s8  ;;  %v1593_v44 = vld [vmem:[%s2861_s17] sm:$0xff] }
   0x6   :  { %s2885_s23 = sld [smem:[#allocation6_spill]]  ;;  %v1636_v45 = vld [vmem:[%s2862_s18] sm:$0xff] }
   0x7   :  { %s2886_s26 = sld [smem:[#allocation7_spill]] }
   0x8   :  { %s2887_s8 = sld [smem:[#allocation8_spill]] }
   0x9   :  { %s2888_s24 = sld [smem:[#allocation9_spill]] }
   0xa   :  { %s2889_s27 = sld [smem:[#allocation10_spill]] }
   0xc   :  { %v158_v1 = vld [vmem:[%s2885_s23 + $0x10] sm:$0xff]  ;;  %v156_v2 = vld [vmem:[%s2885_s23] sm:$0xff]  ;;  %v157_v14 = vld [vmem:[%s2885_s23 + $0x8] sm:$0xff] }
   0xd   :  { %v71_v3 = vld [vmem:[%s2886_s26 + $0x8] sm:$0xf]  ;;  %171 = vperm.xlu0 %1930, %v158_v1   ;;  %161 = vperm.xlu1 %1931, %v156_v2   ;;  %v1844_v6 = vld [vmem:[%s2886_s26] sm:$0xff]  }
   0xe   :  { %v2056_v4 = vunpack.c.l.bf16 %v71_v3  ;;  %v1911_v5 = vld [vmem:[%s2887_s8 + $0x8] sm:$0xff]   ;;  %v1848_v7 = vld [vmem:[%s2887_s8] sm:$0xff]   ;;  %v2067_v9 = vunpack.c.h.bf16 %v1844_v6  ;;  %v2070_v11 = vunpack.c.l.bf16 %v1844_v6  ;;  %v1913_v17 = vld [vmem:[%s2887_s8 + $0x18] sm:$0xff]  }
   0xf   :  { %v1854_v8 = vunpack.c.h.bf16 %v1911_v5  ;;  %v1853_v10 = vunpack.c.l.bf16 %v1911_v5  ;;  %v1850_v12 = vunpack.c.h.bf16 %v1848_v7  ;;  %v75_v13 = vld [vmem:[%s2888_s24] sm:$0xff]  ;;  %v1849_v16 = vunpack.c.l.bf16 %v1848_v7  ;;  %v1912_v18 = vld [vmem:[%s2887_s8 + $0x10] sm:$0xff]   ;;  %v76_v23 = vld [vmem:[%s2888_s24 + $0x8] sm:$0xff] }
  0x10   :  { %129 = vmatpush.msra.mxu0 %v2056_v4  ;;  %v82_v15 = vld [vmem:[%s2889_s27 + $0x18] sm:$0xff]  ;;  %v1862_v20 = vunpack.c.h.bf16 %v1913_v17  ;;  %v1861_v21 = vunpack.c.l.bf16 %v1913_v17  ;;  %v1858_v22 = vunpack.c.h.bf16 %v1912_v18  ;;  %v79_v24 = vld [vmem:[%s2889_s27] sm:$0xff]  ;;  %v1857_v26 = vunpack.c.l.bf16 %v1912_v18  ;;  %v81_v28 = vld [vmem:[%s2889_s27 + $0x10] sm:$0xff] }
  0x11   :  { %196 = vmatpush.msra.mxu1 %v1854_v8  ;;  %95 = vperm.xlu2 %1932, %v81_v28   ;;  %v77_v29 = vld [vmem:[%s2888_s24 + $0x10] sm:$0xff]  ;;  %v1915_v32 = vld [vmem:[%s2887_s8 + $0x28] sm:$0xff]   ;;  %v1914_v37 = vld [vmem:[%s2887_s8 + $0x20] sm:$0xff]  }
  0x12   :  { %130 = vmatpush.msra.mxu0 %v2067_v9  ;;  %v80_v34 = vld [vmem:[%s2889_s27 + $0x8] sm:$0xff]  ;;  %v1870_v35 = vunpack.c.h.bf16 %v1915_v32  ;;  %v1869_v36 = vunpack.c.l.bf16 %v1915_v32  ;;  %v1866_v38 = vunpack.c.h.bf16 %v1914_v37  ;;  %v78_v39 = vld [vmem:[%s2888_s24 + $0x18] sm:$0xff]  ;;  %v1865_v42 = vunpack.c.l.bf16 %v1914_v37  ;;  %v1916_v50 = vld [vmem:[%s2887_s8 + $0x30] sm:$0xff]  }
  0x13   :  { %197 = vmatpush.msra.mxu1 %v1853_v10  ;;  %v1917_v47 = vld [vmem:[%s2887_s8 + $0x38] sm:$0xff]   ;;  %v1874_v51 = vunpack.c.h.bf16 %v1916_v50  ;;  %v1873_v52 = vunpack.c.l.bf16 %v1916_v50  ;;  %v1919_v53 = vld [vmem:[%s2887_s8 + $0x48] sm:$0xff]   ;;  %v1918_v56 = vld [vmem:[%s2887_s8 + $0x40] sm:$0xff]  }
  0x14   :  { %131 = vmatpush.msra.mxu0 %v2070_v11  ;;  %v1878_v48 = vunpack.c.h.bf16 %v1917_v47  ;;  %v1877_v49 = vunpack.c.l.bf16 %v1917_v47  ;;  %v1886_v54 = vunpack.c.h.bf16 %v1919_v53  ;;  %v1885_v55 = vunpack.c.l.bf16 %v1919_v53  ;;  %v1921_v59 = vld [vmem:[%s2887_s8 + $0x58] sm:$0xff]   ;;  %v1920_v62 = vld [vmem:[%s2887_s8 + $0x50] sm:$0xff]   ;;  %v1923_v1 = vld [vmem:[%s2887_s8 + $0x68] sm:$0xff]  }
  0x15   :  { %198 = vmatpush.msra.mxu1 %v1850_v12  ;;  %1689 = vmatmul.msk.f32.vlgmr.msra.gmra.mxu0 %vm103_vm0, %v75_v13  ;;  %v1882_v57 = vunpack.c.h.bf16 %v1918_v56  ;;  %v1881_v58 = vunpack.c.l.bf16 %v1918_v56  ;;  %v1894_v60 = vunpack.c.h.bf16 %v1921_v59  ;;  %v1893_v61 = vunpack.c.l.bf16 %v1921_v59  ;;  %v1922_v5 = vld [vmem:[%s2887_s8 + $0x60] sm:$0xff]   ;;  %v318_v37 = vld [vmem:[%s2858_s10 + $0x8] sm:$0xff] }
  0x16   :  { %166 = vperm.xlu0 %1930, %v157_v14   ;;  %100 = vperm.xlu1 %1931, %v82_v15   ;;  %v1890_v63 = vunpack.c.h.bf16 %v1920_v62  ;;  %v1889_v0 = vunpack.c.l.bf16 %v1920_v62  ;;  %v1902_v2 = vunpack.c.h.bf16 %v1923_v1  ;;  %v1901_v3 = vunpack.c.l.bf16 %v1923_v1  ;;  %v2278_v32 = vld [vmem:[%s2864_s7] sm:$0xff]  ;;  %v1560_v50 = vld [vmem:[%s2860_s15 + $0x8] sm:$0xff] }
  0x17   :  { %199 = vmatpush.msra.mxu1 %v1849_v16  ;;  %419 = vmatpush.msrb.mxu0 %v1862_v20  ;;  %v1898_v6 = vunpack.c.h.bf16 %v1922_v5  ;;  %v1897_v7 = vunpack.c.l.bf16 %v1922_v5  ;;  %v27_v53 = vstv %s2866_s19 }
  0x18   :  { %1693 = vmatmul.msk.f32.vlgmr.msra.gmra.mxu1 %vm174_vm1, %v2093_v19  ;;  %28 = vst [vmem:[#allocation3] sm:$0x1] %v27_v53 }
  0x19   :  { %420 = vmatpush.msrb.mxu0 %v1861_v21  ;;  %90 = vperm.xlu2 %1932, %v80_v34  }
  0x1b   :  { %421 = vmatpush.msrb.mxu0 %v1858_v22 }
  0x1d   :  { %1690 = vmatmul.msk.f32.gmra.mxu0 %vm103_vm0, %v76_v23 }
  0x1e   :  { %85 = vperm.xlu0 %1930, %v79_v24   ;;  %321 = vperm.xlu1 %1931, %v317_v25   ;;  %v2249_v24 = vld [vmem:[%s2863_s6] sm:$0xff]  ;;  %v2254_v25 = vld [vmem:[%s2863_s6 + $0x18] sm:$0xff] }
  0x1f   :  { %422 = vmatpush.msrb.mxu0 %v1857_v26  ;;  %v1657_v59 = vld [vmem:[#allocation3] sm:$0x1] }
  0x20   :  { %1694 = vmatmul.msk.f32.gmra.mxu1 %vm174_vm1, %v2110_v27 }
  0x21   :  { %572 = vmatpush.msra.mxu0 %v1870_v35  ;;  %v2289_v35 = vld [vmem:[%s2863_s6 + $0x10] sm:$0xff]  ;;  %326 = vperm.xlu2 %1932, %v318_v37  }
  0x23   :  { %573 = vmatpush.msra.mxu0 %v1869_v36  ;;  %v2294_v36 = vld [vmem:[%s2864_s7 + $0x8] sm:$0xff] }
  0x25   :  { %1691 = vmatmul.msk.f32.gmra.mxu0 %vm103_vm0, %v77_v29 }
  0x26   :  { %364 = vperm.xlu0 %1930, %v360_v30   ;;  %369 = vperm.xlu1 %1931, %v361_v31   ;;  %v2273_v31 = vld [vmem:[%s2863_s6 + $0x8] sm:$0xff] }
  0x27   :  { %574 = vmatpush.msra.mxu0 %v1866_v38  ;;  %v25_v38 = vstv %s2865_s12 }
  0x28   :  { %1695 = vmatmul.msk.f32.gmra.mxu1 %vm174_vm1, %v2133_v33  ;;  %26 = vst [vmem:[#allocation2] sm:$0x1] %v25_v38 }
  0x29   :  { %575 = vmatpush.msra.mxu0 %v1865_v42 }
  0x2d   :  { %1692 = vmatmul.msk.f32.gmra.mxu0 %vm103_vm0, %v78_v39 }
  0x2e   :  { %1580 = vperm.xlu0 %1930, %v1562_v40   ;;  %1575 = vperm.xlu1 %1931, %v1561_v41   ;;  %v2311_v40 = vld [vmem:[%s2864_s7 + $0x10] sm:$0xff] }
  0x35   :  { %1710 = vmatmul.msk.f32.vlgmr.msrb.gmra.mxu0 %vm174_vm1, %v2093_v19 }
  0x36   :  { %1565 = vperm.xlu0 %1930, %v1559_v43   ;;  %1597 = vperm.xlu1 %1931, %v1593_v44  }
  0x37   :  { %725 = vmatpush.msrb.mxu0 %v1878_v48 }
  0x39   :  { %726 = vmatpush.msrb.mxu0 %v1877_v49  ;;  %v2338_v49 = vld [vmem:[%s2864_s7 + $0x18] sm:$0xff] }
  0x3b   :  { %727 = vmatpush.msrb.mxu0 %v1874_v51 }
  0x3d   :  { %1711 = vmatmul.msk.f32.gmra.mxu0 %vm174_vm1, %v2110_v27 }
  0x3e   :  { %1640 = vperm.xlu0 %1930, %v1636_v45   ;;  %1645 = vperm.xlu1 %1931, %v1637_v46   ;;  %v381_v45 = vld [vmem:[#allocation2] sm:$0x1] }
  0x3f   :  { %728 = vmatpush.msrb.mxu0 %v1873_v52  ;;  %384 = vperm.xlu2 %1932, %v381_v45   ;;  %v1594_v52 = vld [vmem:[%s2861_s17 + $0x8] sm:$0xff] }
  0x45   :  { %1712 = vmatmul.msk.f32.gmra.mxu0 %vm174_vm1, %v2133_v33 }
  0x47   :  { %1570 = vperm.xlu2 %1932, %v1560_v50  }
  0x4d   :  { %1728 = vmatmul.msk.f32.vlgmr.msra.gmra.mxu0 %vm174_vm1, %v2093_v19 }
  0x4e   :  { %878 = vmatpush.msra.mxu0 %v1886_v54 }
  0x4f   :  { %1602 = vperm.xlu2 %1932, %v1594_v52  }
  0x50   :  { %879 = vmatpush.msra.mxu0 %v1885_v55 }
  0x52   :  { %880 = vmatpush.msra.mxu0 %v1882_v57 }
  0x54   :  { %881 = vmatpush.msra.mxu0 %v1881_v58 }
  0x55   :  { %1729 = vmatmul.msk.f32.gmra.mxu0 %vm174_vm1, %v2110_v27 }
  0x57   :  { %1660 = vperm.xlu2 %1932, %v1657_v59  }
  0x5d   :  { %1730 = vmatmul.msk.f32.gmra.mxu0 %vm174_vm1, %v2133_v33 }
  0x65   :  { %1746 = vmatmul.msk.f32.vlgmr.msrb.gmra.mxu0 %vm174_vm1, %v2093_v19 }
  0x66   :  { %1031 = vmatpush.msrb.mxu0 %v1894_v60 }
  0x68   :  { %1032 = vmatpush.msrb.mxu0 %v1893_v61 }
  0x6a   :  { %1033 = vmatpush.msrb.mxu0 %v1890_v63 }
  0x6c   :  { %1034 = vmatpush.msrb.mxu0 %v1889_v0 }
  0x6d   :  { %1747 = vmatmul.msk.f32.gmra.mxu0 %vm174_vm1, %v2110_v27 }
  0x75   :  { %1748 = vmatmul.msk.f32.gmra.mxu0 %vm174_vm1, %v2133_v33 }
  0x7d   :  { %1764 = vmatmul.msk.f32.vlgmr.msra.gmra.mxu0 %vm174_vm1, %v2093_v19 }
  0x7e   :  { %1184 = vmatpush.msra.mxu0 %v1902_v2 }
  0x7f   :  { %v2219_v13 = vpop.permute.xlu0 %171  ;;  %v2237_v21 = vpop.permute.xlu1 %161 }
  0x80   :  { %1185 = vmatpush.msra.mxu0 %v1901_v3  ;;  %v96_v3 = vpop.permute.xlu2 %95 }
  0x82   :  { %1186 = vmatpush.msra.mxu0 %v1898_v6 }
  0x84   :  { %1187 = vmatpush.msra.mxu0 %v1897_v7 }
  0x85   :  { %1765 = vmatmul.msk.f32.gmra.mxu0 %vm174_vm1, %v2110_v27 }
  0x88   :  { %v2230_v18 = vpop.permute.xlu0 %166  ;;  %v101_v7 = vpop.permute.xlu1 %100 }
  0x8d   :  { %1766 = vmatmul.msk.f32.gmra.mxu0 %vm174_vm1, %v2133_v33 }
  0x92   :  { %v2213_v8 = vpop.f32.mrf.mxu0 }
  0x95   :  { %v201_v10 = vpop.f32.mrf.mxu1  ;;  %1782 = vmatmul.msk.f32.vlgmr.msrb.gmra.mxu0 %vm174_vm1, %v2093_v19 }
  0x96   :  { %v2240_v22 = vadd.f32 %v201_v10, %v2237_v21  ;;  %v91_v10 = vpop.permute.xlu2 %90 }
  0x98   :  { %v263_v29 = vmul.f32 %v2070_v11, %v2240_v22 }
  0x9a   :  { %v2217_v12 = vpop.f32.mrf.mxu0 }
  0x9d   :  { %v204_v14 = vpop.f32.mrf.mxu1  ;;  %1783 = vmatmul.msk.f32.gmra.mxu0 %vm174_vm1, %v2110_v27 }
  0x9e   :  { %v2233_v20 = vadd.f32 %v204_v14, %v2230_v18 }
  0xa0   :  { %v264_v28 = vmul.f32 %v2067_v9, %v2233_v20 }
  0xa2   :  { %v2223_v15 = vpop.f32.mrf.mxu0 }
  0xa3   :  { %v2389_v14 = vadd.f32 %v2223_v15, %v96_v3 }
  0xa5   :  { %v207_v16 = vpop.f32.mrf.mxu1  ;;  %1784 = vmatmul.msk.f32.gmra.mxu0 %vm174_vm1, %v2133_v33 }
  0xa6   :  { %v2228_v17 = vadd.f32 %v207_v16, %v2219_v13 }
  0xa8   :  { %239 = vmatpush.msra.mxu2 %v2228_v17  ;;  %1926 = vmatpush.msra.mxu3 %v2228_v17  ;;  %v265_v26 = vmul.f32 %v2228_v17, %v2056_v4 }
  0xaa   :  { %240 = vmatpush.msra.mxu2 %v2233_v20  ;;  %1927 = vmatpush.msra.mxu3 %v2233_v20  ;;  %v2244_v23 = vpop.f32.mrf.mxu0 }
  0xab   :  { %v2392_v16 = vadd.f32 %v2244_v23, %v101_v7 }
  0xac   :  { %241 = vmatpush.msra.mxu2 %v2240_v22  ;;  %1928 = vmatpush.msra.mxu3 %v2240_v22 }
  0xad   :  { %1696 = vmatmul.msk.f32.vlgmr.msra.gmra.mxu2 %vm103_vm0, %v2249_v24  ;;  %1699 = vmatmul.msk.f32.vlgmr.msra.gmra.mxu3 %vm103_vm0, %v2254_v25 }
  0xae   :  { %291 = vmatpush.msrb.mxu3 %v265_v26  ;;  %1800 = vmatmul.msk.f32.vlgmr.msra.gmra.mxu0 %vm174_vm1, %v2093_v19 }
  0xb0   :  { %292 = vmatpush.msrb.mxu3 %v264_v28  ;;  %v2395_v28 = vadd.f32 %v2217_v12, %v91_v10 }
  0xb2   :  { %293 = vmatpush.msrb.mxu3 %v263_v29  ;;  %v424_v30 = vpop.f32.mrf.mxu0 }
  0xb3   :  { %v2320_v43 = vadd.f32 %v424_v30, %v2237_v21 }
  0xb5   :  { %1697 = vmatmul.msk.f32.gmra.mxu2 %vm103_vm0, %v2273_v31  ;;  %1700 = vmatmul.msk.f32.vlgmr.msrb.gmra.mxu3 %vm103_vm0, %v2278_v32  ;;  %v466_v47 = vmul.f32 %v2070_v11, %v2320_v43 }
  0xb6   :  { %1801 = vmatmul.msk.f32.gmra.mxu0 %vm174_vm1, %v2110_v27 }
  0xba   :  { %v427_v34 = vpop.f32.mrf.mxu0 }
  0xbb   :  { %v2314_v41 = vadd.f32 %v427_v34, %v2230_v18  ;;  %v86_v34 = vpop.permute.xlu0 %85 }
  0xbc   :  { %v2400_v38 = vadd.f32 %v2213_v8, %v86_v34  ;;  %v2407_v8 = vld [vmem:[%s2867_s9] sm:$0xff] }
  0xbd   :  { %1698 = vmatmul.msk.f32.gmra.mxu2 %vm103_vm0, %v2289_v35  ;;  %1701 = vmatmul.msk.f32.gmra.mxu3 %vm103_vm0, %v2294_v36  ;;  %v467_v46 = vmul.f32 %v2067_v9, %v2314_v41 }
  0xbe   :  { %1802 = vmatmul.msk.f32.gmra.mxu0 %vm174_vm1, %v2133_v33 }
  0xc2   :  { %v430_v39 = vpop.f32.mrf.mxu0 }
  0xc3   :  { %v2317_v42 = vadd.f32 %v430_v39, %v2219_v13 }
  0xc5   :  { %v468_v44 = vmul.f32 %v2317_v42, %v2056_v4  ;;  %1702 = vmatmul.msk.f32.gmra.mxu3 %vm103_vm0, %v2311_v40  ;;  %446 = vmatpush.msrb.mxu2 %v2317_v42 }
  0xc7   :  { %447 = vmatpush.msrb.mxu2 %v2314_v41  ;;  %482 = vmatpush.msra.mxu3 %v468_v44 }
  0xc9   :  { %448 = vmatpush.msrb.mxu2 %v2320_v43  ;;  %483 = vmatpush.msra.mxu3 %v467_v46 }
  0xca   :  { %1713 = vmatmul.msk.f32.vlgmr.msrb.gmra.mxu2 %vm103_vm0, %v2249_v24  ;;  %v577_v48 = vpop.f32.mrf.mxu0 }
  0xcb   :  { %484 = vmatpush.msra.mxu3 %v466_v47  ;;  %v2364_v57 = vadd.f32 %v577_v48, %v2237_v21 }
  0xcd   :  { %1703 = vmatmul.msk.f32.gmra.mxu3 %vm103_vm0, %v2338_v49  ;;  %v619_v61 = vmul.f32 %v2070_v11, %v2364_v57 }
  0xd2   :  { %1714 = vmatmul.msk.f32.gmra.mxu2 %vm103_vm0, %v2273_v31  ;;  %v580_v51 = vpop.f32.mrf.mxu0 }
  0xd3   :  { %v2358_v55 = vadd.f32 %v580_v51, %v2230_v18 }
  0xd5   :  { %1717 = vmatmul.msk.f32.vlgmr.msra.gmra.mxu3 %vm103_vm0, %v2278_v32  ;;  %v620_v60 = vmul.f32 %v2067_v9, %v2358_v55 }
  0xda   :  { %1715 = vmatmul.msk.f32.gmra.mxu2 %vm103_vm0, %v2289_v35  ;;  %v583_v54 = vpop.f32.mrf.mxu0 }
  0xdb   :  { %v2361_v56 = vadd.f32 %v583_v54, %v2219_v13  ;;  %v2414_v54 = vld [vmem:[%s2867_s9 + $0x8] sm:$0xff] }
  0xdd   :  { %v621_v58 = vmul.f32 %v2361_v56, %v2056_v4  ;;  %1718 = vmatmul.msk.f32.gmra.mxu3 %vm103_vm0, %v2294_v36 }
  0xdf   :  { %635 = vmatpush.msra.mxu2 %v621_v58 }
  0xe1   :  { %636 = vmatpush.msra.mxu2 %v620_v60 }
  0xe2   :  { %1716 = vmatmul.msk.f32.gmra.mxu2 %vm103_vm0, %v2254_v25  ;;  %v730_v59 = vpop.f32.mrf.mxu0 }
  0xe3   :  { %637 = vmatpush.msra.mxu2 %v619_v61 }
  0xe5   :  { %1719 = vmatmul.msk.f32.gmra.mxu3 %vm103_vm0, %v2311_v40 }
  0xea   :  { %1735 = vmatmul.msk.f32.vlgmr.msra.gmra.mxu2 %vm103_vm0, %v2278_v32 }
  0xed   :  { %1720 = vmatmul.msk.f32.gmra.mxu3 %vm103_vm0, %v2338_v49 }
  0xf2   :  { %1736 = vmatmul.msk.f32.gmra.mxu2 %vm103_vm0, %v2294_v36 }
  0xfa   :  { %1737 = vmatmul.msk.f32.gmra.mxu2 %vm103_vm0, %v2311_v40 }
 0x102   :  { %1738 = vmatmul.msk.f32.gmra.mxu2 %vm103_vm0, %v2338_v49 }
 0x130   :  { %v252_v62 = vpop.f32.mrf.mxu3  ;;  %v243_v63 = vpop.f32.mrf.mxu2 }
 0x131   :  { %v258_v29 = vadd.f32 %v252_v62, %v2392_v16  ;;  %v255_v23 = vadd.f32 %v243_v63, %v2400_v38  ;;  %v733_v62 = vpop.f32.mrf.mxu0 }
 0x138   :  { %v295_v0 = vpop.f32.mrf.mxu3  ;;  %v246_v1 = vpop.f32.mrf.mxu2 }
 0x139   :  { %v256_v39 = vadd.f32 %v246_v1, %v2395_v28  ;;  %v307_v47 = vadd.f32 %v295_v0, %v255_v23 }
 0x13b   :  { %v311_v52 = vmax.f32 %v307_v47, 0.0 }
 0x140   :  { %v298_v2 = vpop.f32.mrf.mxu3  ;;  %v249_v5 = vpop.f32.mrf.mxu2 }
 0x141   :  { %v257_v30 = vadd.f32 %v249_v5, %v2389_v14  ;;  %v308_v45 = vadd.f32 %v298_v2, %v256_v39 }
 0x143   :  { %v312_v48 = vmax.f32 %v308_v45, 0.0 }
 0x148   :  { %v301_v6 = vpop.f32.mrf.mxu3 }
 0x149   :  { %v309_v15 = vadd.f32 %v301_v6, %v257_v30 }
 0x14b   :  { %v313_v12 = vmax.f32 %v309_v15, 0.0 }
 0x14d   :  { %v450_v26 = vpop.f32.mrf.mxu2 }
 0x14e   :  { %v462_v6 = vadd.f32 %v450_v26, %v2400_v38  ;;  %v2429_v26 = vadd.f32 %v733_v62, %v2230_v18  ;;  %v2470_v62 = vpop.permute.xlu0 %364 }
 0x150   :  { %v304_v37 = vpop.f32.mrf.mxu3  ;;  %v773_v45 = vmul.f32 %v2067_v9, %v2429_v26 }
 0x151   :  { %v310_v44 = vadd.f32 %v304_v37, %v258_v29  ;;  %v736_v37 = vpop.f32.mrf.mxu0 }
 0x152   :  { %v2423_v15 = vadd.f32 %v736_v37, %v2219_v13 }
 0x153   :  { %v314_v46 = vmax.f32 %v310_v44, 0.0  ;;  %v2433_v44 = vadd.f32 %v730_v59, %v2237_v21 }
 0x154   :  { %v774_v23 = vmul.f32 %v2423_v15, %v2056_v4 }
 0x155   :  { %347 = vmatpush.msrb.mxu1 %v314_v46  ;;  %v453_v50 = vpop.f32.mrf.mxu2  ;;  %2891 = vst [vmem:[#allocation5_spill] sm:$0xff] %v2433_v44  ;;  %v772_v46 = vmul.f32 %v2070_v11, %v2433_v44 }
 0x156   :  { %v463_v2 = vadd.f32 %v453_v50, %v2395_v28  ;;  %v2464_v50 = vpop.permute.xlu1 %321 }
 0x157   :  { %348 = vmatpush.msrb.mxu1 %v313_v12 }
 0x158   :  { %v486_v51 = vpop.f32.mrf.mxu3 }
 0x159   :  { %349 = vmatpush.msrb.mxu1 %v312_v48  ;;  %v498_v29 = vadd.f32 %v486_v51, %v462_v6 }
 0x15b   :  { %350 = vmatpush.msrb.mxu1 %v311_v52  ;;  %v502_v39 = vmax.f32 %v498_v29, 0.0  ;;  %v2467_v52 = vpop.permute.xlu2 %326 }
 0x15c   :  { %1704 = vmatmul.msk.f32.vlgmr.msrb.gmra.mxu1 %vm174_vm1, %v2407_v8 }
 0x15d   :  { %v456_v58 = vpop.f32.mrf.mxu2 }
 0x15e   :  { %v464_v63 = vadd.f32 %v456_v58, %v2389_v14 }
 0x160   :  { %v489_v53 = vpop.f32.mrf.mxu3 }
 0x161   :  { %v499_v7 = vadd.f32 %v489_v53, %v463_v2 }
 0x163   :  { %v503_v34 = vmax.f32 %v499_v7, 0.0 }
 0x164   :  { %1705 = vmatmul.msk.f32.gmra.mxu1 %vm174_vm1, %v2414_v54 }
 0x165   :  { %v459_v61 = vpop.f32.mrf.mxu2 }
 0x166   :  { %v465_v0 = vadd.f32 %v459_v61, %v2392_v16 }
 0x168   :  { %v492_v60 = vpop.f32.mrf.mxu3 }
 0x169   :  { %v500_v3 = vadd.f32 %v492_v60, %v464_v63  ;;  %v2472_v63 = vpop.permute.xlu1 %369 }
 0x16b   :  { %v504_v30 = vmax.f32 %v500_v3, 0.0 }
 0x16d   :  { %v639_v60 = vpop.f32.mrf.mxu2 }
 0x170   :  { %v495_v1 = vpop.f32.mrf.mxu3 }
 0x171   :  { %v501_v5 = vadd.f32 %v495_v1, %v465_v0 }
 0x173   :  { %v505_v10 = vmax.f32 %v501_v5, 0.0 }
 0x175   :  { %518 = vmatpush.msra.mxu1 %v505_v10  ;;  %v642_v5 = vpop.f32.mrf.mxu2  ;;  %v883_v10 = vpop.f32.mrf.mxu0 }
 0x177   :  { %519 = vmatpush.msra.mxu1 %v504_v30 }
 0x179   :  { %520 = vmatpush.msra.mxu1 %v503_v34 }
 0x17b   :  { %521 = vmatpush.msra.mxu1 %v502_v39 }
 0x17c   :  { %1721 = vmatmul.msk.f32.vlgmr.msra.gmra.mxu1 %vm174_vm1, %v2407_v8 }
 0x17d   :  { %599 = vmatpush.msrb.mxu1 %v2361_v56  ;;  %v645_v7 = vpop.f32.mrf.mxu2  ;;  %v886_v39 = vpop.f32.mrf.mxu0 }
 0x17f   :  { %600 = vmatpush.msrb.mxu1 %v2358_v55 }
 0x181   :  { %601 = vmatpush.msrb.mxu1 %v2364_v57 }
 0x183   :  { %788 = vmatpush.msra.mxu1 %v774_v23 }
 0x184   :  { %1722 = vmatmul.msk.f32.gmra.mxu1 %vm174_vm1, %v2414_v54 }
 0x185   :  { %789 = vmatpush.msra.mxu1 %v773_v45  ;;  %v648_v37 = vpop.f32.mrf.mxu2 }
 0x187   :  { %790 = vmatpush.msra.mxu1 %v772_v46 }
 0x18c   :  { %1731 = vmatmul.msk.f32.vlgmr.msrb.gmra.mxu1 %vm103_vm0, %v2249_v24 }
 0x194   :  { %1732 = vmatmul.msk.f32.gmra.mxu1 %vm103_vm0, %v2273_v31 }
 0x19c   :  { %1733 = vmatmul.msk.f32.gmra.mxu1 %vm103_vm0, %v2289_v35 }
 0x1a4   :  { %1734 = vmatmul.msk.f32.gmra.mxu1 %vm103_vm0, %v2254_v25 }
 0x1ac   :  { %1753 = vmatmul.msk.f32.vlgmr.msra.gmra.mxu1 %vm103_vm0, %v2278_v32 }
 0x1b4   :  { %1754 = vmatmul.msk.f32.gmra.mxu1 %vm103_vm0, %v2294_v36 }
 0x1bc   :  { %1755 = vmatmul.msk.f32.gmra.mxu1 %vm103_vm0, %v2311_v40 }
 0x1c4   :  { %1756 = vmatmul.msk.f32.gmra.mxu1 %vm103_vm0, %v2338_v49 }
 0x1d9   :  { %v2460_v47 = vpop.f32.mrf.mxu1 }
 0x1e1   :  { %v2462_v12 = vpop.f32.mrf.mxu1 }
 0x1f9   :  { %v523_v48 = vpop.f32.mrf.mxu1 }
 0x1fa   :  { %v524_v51 = vadd.f32 %v523_v48, %v2464_v50 }
 0x1fc   :  { %v529_v58 = vmax.f32 %v524_v51, 0.0 }
 0x1fe   :  { %v531_v0 = vmul.f32 %v529_v58, %v2470_v62 }
 0x201   :  { %v526_v53 = vpop.f32.mrf.mxu1 }
 0x202   :  { %v527_v59 = vadd.f32 %v526_v53, %v2467_v52 }
 0x204   :  { %v530_v61 = vmax.f32 %v527_v59, 0.0 }
 0x206   :  { %v532_v1 = vmul.f32 %v530_v61, %v2472_v63 }
 0x208   :  { %v533_v2 = vadd.f32 %v532_v1, %v531_v0  ;;  %v889_v1 = vpop.f32.mrf.mxu0 }
 0x209   :  { %v603_v3 = vpop.f32.mrf.mxu1  ;;  %v2481_v33 = vadd.f32 %v889_v1, %v2219_v13 }
 0x20a   :  { %v615_v46 = vadd.f32 %v603_v3, %v2400_v38  ;;  %v2487_v3 = vadd.f32 %v886_v39, %v2230_v18 }
 0x20c   :  { %v651_v59 = vadd.f32 %v639_v60, %v615_v46  ;;  %v2491_v60 = vadd.f32 %v883_v10, %v2237_v21  ;;  %v356_v10 = vadd.f32 %v2462_v12, %v2467_v52  ;;  %v534_v46 = vrot.slane %v533_v2, 4 }
 0x211   :  { %v606_v6 = vpop.f32.mrf.mxu1 }
 0x212   :  { %v616_v23 = vadd.f32 %v606_v6, %v2395_v28  ;;  %v926_v6 = vmul.f32 %v2067_v9, %v2487_v3 }
 0x214   :  { %v652_v53 = vadd.f32 %v642_v5, %v616_v23  ;;  %v927_v5 = vmul.f32 %v2481_v33, %v2056_v4 }
 0x216   :  { %v656_v0 = vmax.f32 %v652_v53, 0.0 }
 0x219   :  { %v609_v29 = vpop.f32.mrf.mxu1 }
 0x21a   :  { %v617_v30 = vadd.f32 %v609_v29, %v2389_v14  ;;  %v655_v29 = vmax.f32 %v651_v59, 0.0 }
 0x21c   :  { %v653_v48 = vadd.f32 %v645_v7, %v617_v30  ;;  %v925_v7 = vmul.f32 %v2070_v11, %v2491_v60  ;;  %v353_v30 = vadd.f32 %v2460_v47, %v2464_v50 }
 0x21e   :  { %v657_v61 = vmax.f32 %v653_v48, 0.0 }
 0x221   :  { %v612_v34 = vpop.f32.mrf.mxu1 }
 0x222   :  { %v618_v45 = vadd.f32 %v612_v34, %v2392_v16  ;;  %v359_v34 = vmax.f32 %v356_v10, 0.0 }
 0x224   :  { %v654_v51 = vadd.f32 %v648_v37, %v618_v45  ;;  %v358_v37 = vmax.f32 %v353_v30, 0.0  ;;  %v373_v39 = vmul.f32 %v2472_v63, %v359_v34 }
 0x226   :  { %v658_v58 = vmax.f32 %v654_v51, 0.0  ;;  %v372_v23 = vmul.f32 %v2470_v62, %v358_v37  ;;  %v535_v51 = vadd.f32 %v534_v46, %v533_v2 }
 0x228   :  { %671 = vmatpush.msrb.mxu3 %v658_v58  ;;  %v374_v45 = vadd.f32 %v373_v39, %v372_v23  ;;  %v536_v59 = vrot.slane %v535_v51, 2  ;;  %v385_v39 = vpop.permute.xlu2 %384 }
 0x22a   :  { %672 = vmatpush.msrb.mxu3 %v657_v61  ;;  %v375_v48 = vrot.slane %v374_v45, 4  ;;  %v537_v12 = vadd.f32 %v536_v59, %v535_v51 }
 0x22c   :  { %673 = vmatpush.msrb.mxu3 %v656_v0  ;;  %v376_v58 = vadd.f32 %v375_v48, %v374_v45  ;;  %v2528_v45 = vperm.slane %v385_v39, 0 }
 0x22e   :  { %674 = vmatpush.msrb.mxu3 %v655_v29  ;;  %v377_v61 = vrot.slane %v376_v58, 2 }
 0x22f   :  { %1739 = vmatmul.msk.f32.vlgmr.msrb.gmra.mxu3 %vm174_vm1, %v2407_v8 }
 0x230   :  { %752 = vmatpush.msra.mxu3 %v2423_v15  ;;  %v378_v1 = vadd.f32 %v377_v61, %v376_v58  ;;  %v1723_v58 = vld [vmem:[%s2868_s2 + $0x1] sm:$0x1] }
 0x232   :  { %753 = vmatpush.msra.mxu3 %v2429_v26  ;;  %v379_v30 = vrot.slane %v378_v1, 1 }
 0x234   :  { %754 = vmatpush.msra.mxu3 %v2433_v44  ;;  %v380_v46 = vadd.f32 %v379_v30, %v378_v1  ;;  %v1036_v44 = vpop.f32.mrf.mxu0 }
 0x236   :  { %941 = vmatpush.msrb.mxu3 %v927_v5  ;;  %v388_v61 = vadd.f32 %v2528_v45, %v380_v46 }
 0x237   :  { %1740 = vmatmul.msk.f32.gmra.mxu3 %vm174_vm1, %v2414_v54 }
 0x238   :  { %942 = vmatpush.msrb.mxu3 %v926_v6  ;;  %v538_v6 = vrot.slane %v537_v12, 1 }
 0x23a   :  { %943 = vmatpush.msrb.mxu3 %v925_v7  ;;  %v792_v7 = vpop.f32.mrf.mxu1  ;;  %v539_v37 = vadd.f32 %v538_v6, %v537_v12  ;;  %v389_v12 = vld [vmem:[%s2868_s2] sm:$0x1] }
 0x23b   :  { %v390_v1 = vmul.f32 %v389_v12, %v388_v61 }
 0x23f   :  { %1749 = vmatmul.msk.f32.vlgmr.msra.gmra.mxu3 %vm103_vm0, %v2249_v24 }
 0x247   :  { %1750 = vmatmul.msk.f32.gmra.mxu3 %vm103_vm0, %v2273_v31 }
 0x24f   :  { %1751 = vmatmul.msk.f32.gmra.mxu3 %vm103_vm0, %v2289_v35 }
 0x257   :  { %1752 = vmatmul.msk.f32.gmra.mxu3 %vm103_vm0, %v2254_v25 }
 0x25f   :  { %1771 = vmatmul.msk.f32.vlgmr.msrb.gmra.mxu3 %vm103_vm0, %v2278_v32 }
 0x267   :  { %1772 = vmatmul.msk.f32.gmra.mxu3 %vm103_vm0, %v2294_v36 }
 0x26f   :  { %1773 = vmatmul.msk.f32.gmra.mxu3 %vm103_vm0, %v2311_v40 }
 0x277   :  { %1774 = vmatmul.msk.f32.gmra.mxu3 %vm103_vm0, %v2338_v49 }
 0x2b2   :  { %v676_v53 = vpop.f32.mrf.mxu3 }
 0x2b3   :  { %v677_v0 = vadd.f32 %v676_v53, %v2464_v50  ;;  %v540_v53 = vadd.f32 %v539_v37, %v2528_v45  ;;  %v1741_v37 = vld [vmem:[%s2868_s2 + $0x2] sm:$0x1] }
 0x2b5   :  { %v682_v47 = vmax.f32 %v677_v0, 0.0  ;;  %v795_v0 = vpop.f32.mrf.mxu1 }
 0x2b7   :  { %v684_v34 = vmul.f32 %v682_v47, %v2470_v62  ;;  %v543_v47 = vmul.f32 %v1723_v58, %v540_v53 }
 0x2b9   :  { %v544_v30 = vperm.slane %v543_v47, 0 }
 0x2ba   :  { %v679_v29 = vpop.f32.mrf.mxu3 }
 0x2bb   :  { %v680_v5 = vadd.f32 %v679_v29, %v2467_v52  ;;  %v545_v58 = vmul.f32 %v544_v30, %v2320_v43 }
 0x2bd   :  { %v683_v10 = vmax.f32 %v680_v5, 0.0  ;;  %v798_v46 = vpop.f32.mrf.mxu1 }
 0x2bf   :  { %v685_v2 = vmul.f32 %v683_v10, %v2472_v63 }
 0x2c1   :  { %v686_v23 = vadd.f32 %v685_v2, %v684_v34  ;;  %v391_v2 = vperm.slane %v390_v1, 0 }
 0x2c2   :  { %v756_v48 = vpop.f32.mrf.mxu3 }
 0x2c3   :  { %v687_v51 = vrot.slane %v686_v23, 4  ;;  %v393_v12 = vmul.f32 %v391_v2, %v2233_v20  ;;  %v392_v47 = vmul.f32 %v391_v2, %v2240_v22  ;;  %v1039_v22 = vpop.f32.mrf.mxu0 }
 0x2c5   :  { %v688_v59 = vadd.f32 %v687_v51, %v686_v23  ;;  %v547_v23 = vmul.f32 %v544_v30, %v2317_v42  ;;  %v546_v51 = vmul.f32 %v544_v30, %v2314_v41 }
 0x2c7   :  { %v689_v29 = vrot.slane %v688_v59, 2  ;;  %v549_v1 = vadd.f32 %v546_v51, %v393_v12 }
 0x2c9   :  { %v690_v5 = vadd.f32 %v689_v29, %v688_v59  ;;  %v394_v59 = vmul.f32 %v391_v2, %v2228_v17 }
 0x2ca   :  { %v759_v6 = vpop.f32.mrf.mxu3 }
 0x2cb   :  { %v691_v10 = vrot.slane %v690_v5, 1  ;;  %v769_v2 = vadd.f32 %v759_v6, %v2395_v28 }
 0x2cd   :  { %v692_v34 = vadd.f32 %v691_v10, %v690_v5  ;;  %v550_v5 = vadd.f32 %v547_v23, %v394_v59 }
 0x2cf   :  { %v693_v39 = vadd.f32 %v692_v34, %v2528_v45  ;;  %v548_v34 = vadd.f32 %v545_v58, %v392_v47 }
 0x2d1   :  { %v696_v53 = vmul.f32 %v1741_v37, %v693_v39  ;;  %v801_v39 = vpop.f32.mrf.mxu1 }
 0x2d2   :  { %v762_v61 = vpop.f32.mrf.mxu3 }
 0x2d3   :  { %v697_v29 = vperm.slane %v696_v53, 0  ;;  %v770_v20 = vadd.f32 %v762_v61, %v2389_v14 }
 0x2d5   :  { %v700_v10 = vmul.f32 %v697_v29, %v2361_v56  ;;  %v699_v42 = vmul.f32 %v697_v29, %v2358_v55  ;;  %v698_v41 = vmul.f32 %v697_v29, %v2364_v57  ;;  %v768_v55 = vadd.f32 %v756_v48, %v2400_v38  ;;  %v1042_v29 = vpop.f32.mrf.mxu0 }
 0x2d6   :  { %v806_v23 = vadd.f32 %v798_v46, %v770_v20  ;;  %v805_v57 = vadd.f32 %v795_v0, %v769_v2  ;;  %v2562_v47 = vadd.f32 %v1042_v29, %v2219_v13  ;;  %v2568_v48 = vadd.f32 %v1039_v22, %v2230_v18 }
 0x2d7   :  { %v2551_v37 = vadd.f32 %v700_v10, %v550_v5  ;;  %v2553_v43 = vadd.f32 %v699_v42, %v549_v1  ;;  %v2555_v17 = vadd.f32 %v698_v41, %v548_v34  ;;  %v804_v58 = vadd.f32 %v792_v7, %v768_v55  ;;  %v1924_v10 = vld [vmem:[%s2887_s8 + $0x70] sm:$0xff]   ;;  %v2892_v41 = vld [vmem:[#allocation4_spill] sm:$0xff] }
 0x2d8   :  { %v810_v59 = vmax.f32 %v806_v23, 0.0  ;;  %v809_v12 = vmax.f32 %v805_v57, 0.0  ;;  %v2572_v7 = vadd.f32 %v1036_v44, %v2237_v21  ;;  %v1080_v0 = vmul.f32 %v2562_v47, %v2056_v4  ;;  %v1925_v44 = vld [vmem:[%s2887_s8 + $0x78] sm:$0xff]  }
 0x2d9   :  { %v808_v61 = vmax.f32 %v804_v58, 0.0  ;;  %v1079_v6 = vmul.f32 %v2067_v9, %v2568_v48  ;;  %v1910_v5 = vunpack.c.h.bf16 %v1925_v44  ;;  %v1909_v1 = vunpack.c.l.bf16 %v1925_v44 }
 0x2da   :  { %v765_v30 = vpop.f32.mrf.mxu3  ;;  %v1078_v46 = vmul.f32 %v2070_v11, %v2572_v7  ;;  %v1906_v42 = vunpack.c.h.bf16 %v1924_v10  ;;  %v1905_v34 = vunpack.c.l.bf16 %v1924_v10 }
 0x2db   :  { %v771_v56 = vadd.f32 %v765_v30, %v2392_v16 }
 0x2dd   :  { %v807_v51 = vadd.f32 %v801_v39, %v771_v56 }
 0x2df   :  { %v811_v53 = vmax.f32 %v807_v51, 0.0 }
 0x2e1   :  { %824 = vmatpush.msrb.mxu2 %v811_v53 }
 0x2e2   :  { %v945_v56 = vpop.f32.mrf.mxu3 }
 0x2e3   :  { %825 = vmatpush.msrb.mxu2 %v810_v59 }
 0x2e5   :  { %826 = vmatpush.msrb.mxu2 %v809_v12 }
 0x2e7   :  { %827 = vmatpush.msrb.mxu2 %v808_v61 }
 0x2e8   :  { %1757 = vmatmul.msk.f32.vlgmr.msrb.gmra.mxu2 %vm174_vm1, %v2407_v8 }
 0x2e9   :  { %905 = vmatpush.msra.mxu2 %v2481_v33 }
 0x2ea   :  { %v948_v58 = vpop.f32.mrf.mxu3 }
 0x2eb   :  { %906 = vmatpush.msra.mxu2 %v2487_v3 }
 0x2ed   :  { %907 = vmatpush.msra.mxu2 %v2491_v60 }
 0x2ef   :  { %1094 = vmatpush.msrb.mxu2 %v1080_v0 }
 0x2f0   :  { %1758 = vmatmul.msk.f32.gmra.mxu2 %vm174_vm1, %v2414_v54 }
 0x2f1   :  { %1095 = vmatpush.msrb.mxu2 %v1079_v6  ;;  %v1759_v6 = vld [vmem:[%s2868_s2 + $0x3] sm:$0x1] }
 0x2f2   :  { %v951_v44 = vpop.f32.mrf.mxu3 }
 0x2f3   :  { %1096 = vmatpush.msrb.mxu2 %v1078_v46 }
 0x2f8   :  { %1767 = vmatmul.msk.f32.vlgmr.msra.gmra.mxu2 %vm103_vm0, %v2249_v24 }
 0x2f9   :  { %1337 = vmatpush.msra.mxu2 %v1910_v5  ;;  %v1189_v5 = vpop.f32.mrf.mxu0 }
 0x2fb   :  { %1338 = vmatpush.msra.mxu2 %v1909_v1 }
 0x2fd   :  { %1339 = vmatpush.msra.mxu2 %v1906_v42 }
 0x2ff   :  { %1340 = vmatpush.msra.mxu2 %v1905_v34 }
 0x300   :  { %1768 = vmatmul.msk.f32.gmra.mxu2 %vm103_vm0, %v2273_v31 }
 0x308   :  { %1769 = vmatmul.msk.f32.gmra.mxu2 %vm103_vm0, %v2289_v35 }
 0x310   :  { %1770 = vmatmul.msk.f32.gmra.mxu2 %vm103_vm0, %v2254_v25 }
 0x318   :  { %1789 = vmatmul.msk.f32.vlgmr.msrb.gmra.mxu2 %vm103_vm0, %v2278_v32 }
 0x320   :  { %1790 = vmatmul.msk.f32.gmra.mxu2 %vm103_vm0, %v2294_v36 }
 0x328   :  { %1791 = vmatmul.msk.f32.gmra.mxu2 %vm103_vm0, %v2311_v40 }
 0x330   :  { %1792 = vmatmul.msk.f32.gmra.mxu2 %vm103_vm0, %v2338_v49 }
 0x338   :  { %1818 = vmatmul.msk.f32.vlgmr.msra.gmra.mxu2 %vm174_vm1, %v2093_v19 }
 0x340   :  { %1819 = vmatmul.msk.f32.gmra.mxu2 %vm174_vm1, %v2110_v27 }
 0x348   :  { %1820 = vmatmul.msk.f32.gmra.mxu2 %vm174_vm1, %v2892_v41 }
 0x36b   :  { %v829_v20 = vpop.f32.mrf.mxu2 }
 0x36c   :  { %v830_v30 = vadd.f32 %v829_v20, %v2464_v50  ;;  %v2893_v20 = vld [vmem:[#allocation5_spill] sm:$0xff] }
 0x36e   :  { %v835_v22 = vmax.f32 %v830_v30, 0.0 }
 0x370   :  { %v837_v23 = vmul.f32 %v835_v22, %v2470_v62 }
 0x373   :  { %v832_v39 = vpop.f32.mrf.mxu2 }
 0x374   :  { %v833_v2 = vadd.f32 %v832_v39, %v2467_v52 }
 0x376   :  { %v836_v55 = vmax.f32 %v833_v2, 0.0 }
 0x378   :  { %v838_v51 = vmul.f32 %v836_v55, %v2472_v63 }
 0x37a   :  { %v839_v19 = vadd.f32 %v838_v51, %v837_v23  ;;  %v954_v51 = vpop.f32.mrf.mxu3 }
 0x37b   :  { %v909_v57 = vpop.f32.mrf.mxu2 }
 0x37c   :  { %v840_v53 = vrot.slane %v839_v19, 4 }
 0x37e   :  { %v841_v27 = vadd.f32 %v840_v53, %v839_v19  ;;  %v1192_v19 = vpop.f32.mrf.mxu0  ;;  %v921_v53 = vadd.f32 %v909_v57, %v2400_v38 }
 0x37f   :  { %v2642_v57 = vadd.f32 %v1192_v19, %v2230_v18 }
 0x380   :  { %v842_v59 = vrot.slane %v841_v27, 2 }
 0x382   :  { %v843_v12 = vadd.f32 %v842_v59, %v841_v27 }
 0x383   :  { %v912_v29 = vpop.f32.mrf.mxu2 }
 0x384   :  { %v844_v61 = vrot.slane %v843_v12, 1 }
 0x386   :  { %v845_v0 = vadd.f32 %v844_v61, %v843_v12 }
 0x388   :  { %v846_v46 = vadd.f32 %v845_v0, %v2528_v45  ;;  %v1195_v0 = vpop.f32.mrf.mxu0 }
 0x38a   :  { %v849_v1 = vmul.f32 %v1759_v6, %v846_v46  ;;  %v2636_v46 = vadd.f32 %v1195_v0, %v2219_v13 }
 0x38b   :  { %v915_v10 = vpop.f32.mrf.mxu2 }
 0x38c   :  { %v850_v42 = vperm.slane %v849_v1, 0  ;;  %v923_v55 = vadd.f32 %v915_v10, %v2389_v14 }
 0x38e   :  { %v853_v34 = vmul.f32 %v850_v42, %v2423_v15  ;;  %v852_v41 = vmul.f32 %v850_v42, %v2429_v26  ;;  %v851_v30 = vmul.f32 %v850_v42, %v2893_v20  ;;  %v922_v15 = vadd.f32 %v912_v29, %v2395_v28 }
 0x38f   :  { %v959_v27 = vadd.f32 %v951_v44, %v923_v55  ;;  %v1232_v29 = vmul.f32 %v2067_v9, %v2642_v57 }
 0x390   :  { %v2623_v39 = vadd.f32 %v853_v34, %v2551_v37  ;;  %v2626_v22 = vadd.f32 %v852_v41, %v2553_v43  ;;  %v2629_v2 = vadd.f32 %v851_v30, %v2555_v17  ;;  %v958_v59 = vadd.f32 %v948_v58, %v922_v15 }
 0x391   :  { %v957_v43 = vadd.f32 %v945_v56, %v921_v53  ;;  %v963_v61 = vmax.f32 %v959_v27, 0.0  ;;  %v2646_v56 = vadd.f32 %v1189_v5, %v2237_v21  ;;  %v1233_v58 = vmul.f32 %v2636_v46, %v2056_v4 }
 0x392   :  { %v962_v17 = vmax.f32 %v958_v59, 0.0 }
 0x393   :  { %v918_v23 = vpop.f32.mrf.mxu2  ;;  %v961_v6 = vmax.f32 %v957_v43, 0.0  ;;  %v1231_v44 = vmul.f32 %v2070_v11, %v2646_v56 }
 0x394   :  { %v924_v26 = vadd.f32 %v918_v23, %v2392_v16 }
 0x396   :  { %v960_v37 = vadd.f32 %v954_v51, %v924_v26 }
 0x398   :  { %v964_v12 = vmax.f32 %v960_v37, 0.0 }
 0x39a   :  { %977 = vmatpush.msrb.mxu1 %v964_v12 }
 0x39b   :  { %v1098_v5 = vpop.f32.mrf.mxu2 }
 0x39c   :  { %978 = vmatpush.msrb.mxu1 %v963_v61 }
 0x39e   :  { %979 = vmatpush.msrb.mxu1 %v962_v17  ;;  %v1777_v17 = vld [vmem:[%s2868_s2 + $0x4] sm:$0x1] }
 0x3a0   :  { %980 = vmatpush.msrb.mxu1 %v961_v6 }
 0x3a1   :  { %1775 = vmatmul.msk.f32.vlgmr.msrb.gmra.mxu1 %vm174_vm1, %v2407_v8 }
 0x3a2   :  { %1058 = vmatpush.msra.mxu1 %v2562_v47 }
 0x3a3   :  { %v1101_v10 = vpop.f32.mrf.mxu2 }
 0x3a4   :  { %1059 = vmatpush.msra.mxu1 %v2568_v48 }
 0x3a6   :  { %1060 = vmatpush.msra.mxu1 %v2572_v7 }
 0x3a8   :  { %1247 = vmatpush.msrb.mxu1 %v1233_v58 }
 0x3a9   :  { %1776 = vmatmul.msk.f32.gmra.mxu1 %vm174_vm1, %v2414_v54 }
 0x3aa   :  { %1248 = vmatpush.msrb.mxu1 %v1232_v29 }
 0x3ab   :  { %v1104_v30 = vpop.f32.mrf.mxu2 }
 0x3ac   :  { %1249 = vmatpush.msrb.mxu1 %v1231_v44 }
 0x3b1   :  { %1785 = vmatmul.msk.f32.vlgmr.msra.gmra.mxu1 %vm103_vm0, %v2249_v24 }
 0x3b2   :  { %1502 = vmatpush.msra.mxu1 %v2056_v4 }
 0x3b3   :  { %v1107_v27 = vpop.f32.mrf.mxu2 }
 0x3b4   :  { %1503 = vmatpush.msra.mxu1 %v2067_v9 }
 0x3b6   :  { %1504 = vmatpush.msra.mxu1 %v2070_v11 }
 0x3b9   :  { %1786 = vmatmul.msk.f32.gmra.mxu1 %vm103_vm0, %v2273_v31 }
 0x3bb   :  { %v1342_v6 = vpop.f32.mrf.mxu2 }
 0x3c1   :  { %1787 = vmatmul.msk.f32.gmra.mxu1 %vm103_vm0, %v2289_v35 }
 0x3c9   :  { %1788 = vmatmul.msk.f32.gmra.mxu1 %vm103_vm0, %v2254_v25 }
 0x3d1   :  { %1807 = vmatmul.msk.f32.vlgmr.msrb.gmra.mxu1 %vm103_vm0, %v2278_v32 }
 0x3d9   :  { %1808 = vmatmul.msk.f32.gmra.mxu1 %vm103_vm0, %v2294_v36 }
 0x3e1   :  { %1809 = vmatmul.msk.f32.gmra.mxu1 %vm103_vm0, %v2311_v40 }
 0x3e9   :  { %1810 = vmatmul.msk.f32.gmra.mxu1 %vm103_vm0, %v2338_v49 }
 0x41e   :  { %v982_v1 = vpop.f32.mrf.mxu1 }
 0x41f   :  { %v983_v42 = vadd.f32 %v982_v1, %v2464_v50 }
 0x421   :  { %v988_v41 = vmax.f32 %v983_v42, 0.0 }
 0x423   :  { %v990_v23 = vmul.f32 %v988_v41, %v2470_v62 }
 0x426   :  { %v985_v34 = vpop.f32.mrf.mxu1 }
 0x427   :  { %v986_v20 = vadd.f32 %v985_v34, %v2467_v52 }
 0x429   :  { %v989_v55 = vmax.f32 %v986_v20, 0.0 }
 0x42b   :  { %v991_v51 = vmul.f32 %v989_v55, %v2472_v63 }
 0x42d   :  { %v992_v19 = vadd.f32 %v991_v51, %v990_v23 }
 0x42e   :  { %v1062_v15 = vpop.f32.mrf.mxu1 }
 0x42f   :  { %v993_v26 = vrot.slane %v992_v19, 4 }
 0x431   :  { %v994_v53 = vadd.f32 %v993_v26, %v992_v19  ;;  %v1345_v19 = vpop.f32.mrf.mxu2 }
 0x433   :  { %v995_v37 = vrot.slane %v994_v53, 2 }
 0x435   :  { %v996_v59 = vadd.f32 %v995_v37, %v994_v53 }
 0x436   :  { %v1065_v12 = vpop.f32.mrf.mxu1 }
 0x437   :  { %v997_v43 = vrot.slane %v996_v59, 1  ;;  %v1075_v26 = vadd.f32 %v1065_v12, %v2395_v28 }
 0x439   :  { %v998_v61 = vadd.f32 %v997_v43, %v996_v59 }
 0x43b   :  { %v999_v0 = vadd.f32 %v998_v61, %v2528_v45 }
 0x43d   :  { %v1002_v58 = vmul.f32 %v1777_v17, %v999_v0 }
 0x43e   :  { %v1068_v29 = vpop.f32.mrf.mxu1 }
 0x43f   :  { %v1003_v44 = vperm.slane %v1002_v58, 0  ;;  %v1076_v23 = vadd.f32 %v1068_v29, %v2389_v14 }
 0x441   :  { %v1006_v1 = vmul.f32 %v1003_v44, %v2481_v33  ;;  %v1005_v42 = vmul.f32 %v1003_v44, %v2487_v3  ;;  %v1004_v34 = vmul.f32 %v1003_v44, %v2491_v60  ;;  %v1074_v3 = vadd.f32 %v1062_v15, %v2400_v38  ;;  %v1795_v44 = vld [vmem:[%s2868_s2 + $0x5] sm:$0x1] }
 0x442   :  { %v1112_v60 = vadd.f32 %v1104_v30, %v1076_v23 }
 0x443   :  { %v2688_v41 = vadd.f32 %v1006_v1, %v2623_v39  ;;  %v2691_v20 = vadd.f32 %v1005_v42, %v2626_v22  ;;  %v2694_v55 = vadd.f32 %v1004_v34, %v2629_v2  ;;  %v1111_v39 = vadd.f32 %v1101_v10, %v1075_v26  ;;  %v1348_v2 = vpop.f32.mrf.mxu2 }
 0x444   :  { %v1110_v59 = vadd.f32 %v1098_v5, %v1074_v3  ;;  %v1116_v22 = vmax.f32 %v1112_v60, 0.0  ;;  %v2701_v17 = vadd.f32 %v1348_v2, %v2219_v13  ;;  %v2707_v10 = vadd.f32 %v1345_v19, %v2230_v18 }
 0x445   :  { %v1115_v43 = vmax.f32 %v1111_v39, 0.0  ;;  %v2711_v5 = vadd.f32 %v1342_v6, %v2237_v21 }
 0x446   :  { %v1071_v51 = vpop.f32.mrf.mxu1  ;;  %v1114_v61 = vmax.f32 %v1110_v59, 0.0  ;;  %v1386_v30 = vmul.f32 %v2701_v17, %v2056_v4  ;;  %v1385_v13 = vmul.f32 %v2067_v9, %v2707_v10 }
 0x447   :  { %v1077_v33 = vadd.f32 %v1071_v51, %v2392_v16  ;;  %v1384_v15 = vmul.f32 %v2070_v11, %v2711_v5 }
 0x449   :  { %v1113_v53 = vadd.f32 %v1107_v27, %v1077_v33 }
 0x44b   :  { %v1117_v37 = vmax.f32 %v1113_v53, 0.0 }
 0x44d   :  { %1130 = vmatpush.msra.mxu3 %v1117_v37 }
 0x44f   :  { %1131 = vmatpush.msra.mxu3 %v1116_v22 }
 0x451   :  { %1132 = vmatpush.msra.mxu3 %v1115_v43 }
 0x453   :  { %1133 = vmatpush.msra.mxu3 %v1114_v61 }
 0x454   :  { %1793 = vmatmul.msk.f32.vlgmr.msra.gmra.mxu3 %vm174_vm1, %v2407_v8 }
 0x455   :  { %1211 = vmatpush.msrb.mxu3 %v2636_v46 }
 0x457   :  { %1212 = vmatpush.msrb.mxu3 %v2642_v57 }
 0x459   :  { %1213 = vmatpush.msrb.mxu3 %v2646_v56 }
 0x45b   :  { %1400 = vmatpush.msra.mxu3 %v1386_v30 }
 0x45c   :  { %1794 = vmatmul.msk.f32.gmra.mxu3 %vm174_vm1, %v2414_v54 }
 0x45d   :  { %1401 = vmatpush.msra.mxu3 %v1385_v13  ;;  %v1937_v13 = vld [vmem:[%s2863_s6] sm:$0xff] }
 0x45f   :  { %1402 = vmatpush.msra.mxu3 %v1384_v15  ;;  %v1938_v15 = vld [vmem:[%s2863_s6 + $0x8] sm:$0xff] }
 0x464   :  { %1803 = vmatmul.msk.f32.vlgmr.msrb.gmra.mxu3 %vm103_vm0, %v2249_v24  ;;  %v1251_v24 = vpop.f32.mrf.mxu1 }
 0x46c   :  { %1804 = vmatmul.msk.f32.gmra.mxu3 %vm103_vm0, %v2273_v31  ;;  %v1254_v12 = vpop.f32.mrf.mxu1 }
 0x474   :  { %1805 = vmatmul.msk.f32.gmra.mxu3 %vm103_vm0, %v2289_v35  ;;  %v1257_v42 = vpop.f32.mrf.mxu1 }
 0x47c   :  { %1806 = vmatmul.msk.f32.gmra.mxu3 %vm103_vm0, %v2254_v25  ;;  %v1260_v59 = vpop.f32.mrf.mxu1 }
 0x484   :  { %1825 = vmatmul.msk.f32.vlgmr.msra.gmra.mxu3 %vm103_vm0, %v2278_v32 }
 0x48c   :  { %1826 = vmatmul.msk.f32.gmra.mxu3 %vm103_vm0, %v2294_v36 }
 0x494   :  { %1827 = vmatmul.msk.f32.gmra.mxu3 %vm103_vm0, %v2311_v40 }
 0x49c   :  { %1828 = vmatmul.msk.f32.gmra.mxu3 %vm103_vm0, %v2338_v49 }
 0x4d7   :  { %v1135_v4 = vpop.f32.mrf.mxu3 }
 0x4d8   :  { %v1136_v9 = vadd.f32 %v1135_v4, %v2464_v50  ;;  %v1939_v4 = vld [vmem:[%s2863_s6 + $0x10] sm:$0xff] }
 0x4da   :  { %v1141_v18 = vmax.f32 %v1136_v9, 0.0  ;;  %v1940_v9 = vld [vmem:[%s2863_s6 + $0x18] sm:$0xff] }
 0x4dc   :  { %v1143_v31 = vmul.f32 %v1141_v18, %v2470_v62 }
 0x4df   :  { %v1138_v11 = vpop.f32.mrf.mxu3 }
 0x4e0   :  { %v1139_v21 = vadd.f32 %v1138_v11, %v2467_v52 }
 0x4e2   :  { %v1142_v25 = vmax.f32 %v1139_v21, 0.0 }
 0x4e4   :  { %v1144_v32 = vmul.f32 %v1142_v25, %v2472_v63 }
 0x4e6   :  { %v1145_v35 = vadd.f32 %v1144_v32, %v1143_v31 }
 0x4e7   :  { %v1215_v36 = vpop.f32.mrf.mxu3 }
 0x4e8   :  { %v1146_v27 = vrot.slane %v1145_v35, 4 }
 0x4ea   :  { %v1147_v40 = vadd.f32 %v1146_v27, %v1145_v35 }
 0x4ec   :  { %v1148_v0 = vrot.slane %v1147_v40, 2 }
 0x4ee   :  { %v1149_v49 = vadd.f32 %v1148_v0, %v1147_v40 }
 0x4ef   :  { %v1218_v6 = vpop.f32.mrf.mxu3 }
 0x4f0   :  { %v1150_v58 = vrot.slane %v1149_v49, 1  ;;  %v1228_v22 = vadd.f32 %v1218_v6, %v2395_v28 }
 0x4f2   :  { %v1151_v29 = vadd.f32 %v1150_v58, %v1149_v49  ;;  %v1264_v61 = vadd.f32 %v1254_v12, %v1228_v22 }
 0x4f4   :  { %v1152_v1 = vadd.f32 %v1151_v29, %v2528_v45 }
 0x4f6   :  { %v1155_v34 = vmul.f32 %v1795_v44, %v1152_v1 }
 0x4f7   :  { %v1221_v23 = vpop.f32.mrf.mxu3 }
 0x4f8   :  { %v1156_v51 = vperm.slane %v1155_v34, 0  ;;  %v1229_v39 = vadd.f32 %v1221_v23, %v2389_v14 }
 0x4fa   :  { %v1159_v19 = vmul.f32 %v1156_v51, %v2562_v47  ;;  %v1158_v26 = vmul.f32 %v1156_v51, %v2568_v48  ;;  %v1157_v33 = vmul.f32 %v1156_v51, %v2572_v7  ;;  %v1227_v47 = vadd.f32 %v1215_v36, %v2400_v38 }
 0x4fb   :  { %v1265_v2 = vadd.f32 %v1257_v42, %v1229_v39  ;;  %v1813_v42 = vld [vmem:[%s2868_s2 + $0x6] sm:$0x1] }
 0x4fc   :  { %v1162_v3 = vadd.f32 %v1159_v19, %v2688_v41  ;;  %v1161_v60 = vadd.f32 %v1158_v26, %v2691_v20  ;;  %v1160_v53 = vadd.f32 %v1157_v33, %v2694_v55  ;;  %v1263_v30 = vadd.f32 %v1251_v24, %v1227_v47 }
 0x4fd   :  { %v1269_v41 = vmax.f32 %v1265_v2, 0.0  ;;  %v1268_v20 = vmax.f32 %v1264_v61, 0.0 }
 0x4fe   :  { %v1267_v55 = vmax.f32 %v1263_v30, 0.0 }
 0x4ff   :  { %v1224_v37 = vpop.f32.mrf.mxu3 }
 0x500   :  { %v1230_v43 = vadd.f32 %v1224_v37, %v2392_v16 }
 0x502   :  { %v1266_v48 = vadd.f32 %v1260_v59, %v1230_v43 }
 0x504   :  { %v1270_v7 = vmax.f32 %v1266_v48, 0.0 }
 0x506   :  { %1283 = vmatpush.msrb.mxu0 %v1270_v7 }
 0x507   :  { %v1404_v31 = vpop.f32.mrf.mxu3 }
 0x508   :  { %1284 = vmatpush.msrb.mxu0 %v1269_v41 }
 0x50a   :  { %1285 = vmatpush.msrb.mxu0 %v1268_v20 }
 0x50c   :  { %1286 = vmatpush.msrb.mxu0 %v1267_v55 }
 0x50d   :  { %1811 = vmatmul.msk.f32.vlgmr.msrb.gmra.mxu0 %vm174_vm1, %v2407_v8 }
 0x50e   :  { %1364 = vmatpush.msra.mxu0 %v2701_v17 }
 0x50f   :  { %v1407_v49 = vpop.f32.mrf.mxu3 }
 0x510   :  { %1365 = vmatpush.msra.mxu0 %v2707_v10 }
 0x512   :  { %1366 = vmatpush.msra.mxu0 %v2711_v5 }
 0x515   :  { %1812 = vmatmul.msk.f32.gmra.mxu0 %vm174_vm1, %v2414_v54 }
 0x517   :  { %v1410_v23 = vpop.f32.mrf.mxu3 }
 0x51d   :  { %1821 = vmatmul.msk.f32.vlgmr.msra.gmra.mxu0 %vm103_vm0, %v1937_v13 }
 0x51f   :  { %v1413_v48 = vpop.f32.mrf.mxu3 }
 0x525   :  { %1822 = vmatmul.msk.f32.gmra.mxu0 %vm103_vm0, %v1938_v15  ;;  %v1473_v15 = vld [vmem:[%s2869_s14] sm:$0xff] }
 0x526   :  { %1832 = vmatmul.msk.f32.vlgmr.msra.gmra.mxu1 %vm103_vm0, %v1473_v15 }
 0x52d   :  { %1823 = vmatmul.msk.f32.gmra.mxu0 %vm103_vm0, %v1939_v4 }
 0x535   :  { %1824 = vmatmul.msk.f32.gmra.mxu0 %vm103_vm0, %v1940_v9 }
 0x58a   :  { %v1288_v11 = vpop.f32.mrf.mxu0 }
 0x58b   :  { %v1289_v18 = vadd.f32 %v1288_v11, %v2464_v50 }
 0x58d   :  { %v1294_v24 = vmax.f32 %v1289_v18, 0.0 }
 0x58f   :  { %v1296_v35 = vmul.f32 %v1294_v24, %v2470_v62 }
 0x592   :  { %v1291_v21 = vpop.f32.mrf.mxu0 }
 0x593   :  { %v1292_v25 = vadd.f32 %v1291_v21, %v2467_v52 }
 0x595   :  { %v1295_v32 = vmax.f32 %v1292_v25, 0.0 }
 0x597   :  { %v1297_v36 = vmul.f32 %v1295_v32, %v2472_v63 }
 0x599   :  { %v1298_v27 = vadd.f32 %v1297_v36, %v1296_v35 }
 0x59a   :  { %v1368_v40 = vpop.f32.mrf.mxu0 }
 0x59b   :  { %v1299_v12 = vrot.slane %v1298_v27, 4  ;;  %v1380_v30 = vadd.f32 %v1368_v40, %v2400_v38 }
 0x59d   :  { %v1300_v0 = vadd.f32 %v1299_v12, %v1298_v27  ;;  %v1476_v27 = vld [vmem:[%s2869_s14 + $0x18] sm:$0xff] }
 0x59f   :  { %v1301_v6 = vrot.slane %v1300_v0, 2 }
 0x5a1   :  { %v1302_v58 = vadd.f32 %v1301_v6, %v1300_v0 }
 0x5a2   :  { %v1371_v29 = vpop.f32.mrf.mxu0 }
 0x5a3   :  { %v1303_v44 = vrot.slane %v1302_v58, 1  ;;  %v1381_v61 = vadd.f32 %v1371_v29, %v2395_v28  ;;  %v1506_v6 = vpop.f32.mrf.mxu1 }
 0x5a5   :  { %v1304_v1 = vadd.f32 %v1303_v44, %v1302_v58 }
 0x5a7   :  { %v1305_v34 = vadd.f32 %v1304_v1, %v2528_v45 }
 0x5a9   :  { %v1308_v51 = vmul.f32 %v1813_v42, %v1305_v34  ;;  %v1581_v34 = vpop.permute.xlu0 %1580 }
 0x5aa   :  { %v1374_v19 = vpop.f32.mrf.mxu0 }
 0x5ab   :  { %v1309_v26 = vperm.slane %v1308_v51, 0  ;;  %v1382_v47 = vadd.f32 %v1374_v19, %v2389_v14 }
 0x5ad   :  { %v1312_v33 = vmul.f32 %v1309_v26, %v2636_v46  ;;  %v1311_v39 = vmul.f32 %v1309_v26, %v2642_v57  ;;  %v1310_v37 = vmul.f32 %v1309_v26, %v2646_v56  ;;  %v1418_v41 = vadd.f32 %v1410_v23, %v1382_v47 }
 0x5ae   :  { %v1417_v46 = vadd.f32 %v1407_v49, %v1381_v61  ;;  %v1416_v57 = vadd.f32 %v1404_v31, %v1380_v30  ;;  %v1469_v49 = vld [vmem:[%s2870_s13] sm:$0xff] }
 0x5af   :  { %v1315_v59 = vadd.f32 %v1312_v33, %v1162_v3  ;;  %v1314_v22 = vadd.f32 %v1311_v39, %v1161_v60  ;;  %v1313_v43 = vadd.f32 %v1310_v37, %v1160_v53  ;;  %v1422_v13 = vmax.f32 %v1418_v41, 0.0  ;;  %v1576_v39 = vpop.permute.xlu1 %1575 }
 0x5b0   :  { %v1421_v56 = vmax.f32 %v1417_v46, 0.0  ;;  %v1420_v3 = vmax.f32 %v1416_v57, 0.0  ;;  %v1592_v46 = vld [vmem:[%s2871_s16 + $0x8] sm:$0xff] }
 0x5b2   :  { %v1377_v2 = vpop.f32.mrf.mxu0 }
 0x5b3   :  { %v1383_v7 = vadd.f32 %v1377_v2, %v2392_v16 }
 0x5b5   :  { %v1419_v20 = vadd.f32 %v1413_v48, %v1383_v7  ;;  %v1566_v48 = vpop.permute.xlu0 %1565 }
 0x5b7   :  { %v1423_v55 = vmax.f32 %v1419_v20, 0.0  ;;  %v1591_v20 = vld [vmem:[%s2871_s16] sm:$0xff]  ;;  %v1598_v57 = vpop.permute.xlu1 %1597 }
 0x5b9   :  { %1436 = vmatpush.msrb.mxu2 %v1423_v55 }
 0x5bb   :  { %1437 = vmatpush.msrb.mxu2 %v1422_v13 }
 0x5bd   :  { %1438 = vmatpush.msrb.mxu2 %v1421_v56 }
 0x5bf   :  { %1439 = vmatpush.msrb.mxu2 %v1420_v3 }
 0x5c0   :  { %1829 = vmatmul.msk.f32.vlgmr.msrb.gmra.mxu2 %vm174_vm1, %v2407_v8 }
 0x5c8   :  { %1830 = vmatmul.msk.f32.gmra.mxu2 %vm174_vm1, %v2414_v54 }
 0x643   :  { %v1441_v14 = vpop.f32.mrf.mxu2 }
 0x644   :  { %v1442_v16 = vadd.f32 %v1441_v14, %v2464_v50  ;;  %v1474_v50 = vld [vmem:[%s2869_s14 + $0x8] sm:$0xff] }
 0x645   :  { %1833 = vmatmul.msk.f32.gmra.mxu1 %vm103_vm0, %v1474_v50 }
 0x646   :  { %v1447_v38 = vmax.f32 %v1442_v16, 0.0 }
 0x648   :  { %v1449_v4 = vmul.f32 %v1447_v38, %v2470_v62  ;;  %v1831_v62 = vld [vmem:[%s2868_s2 + $0x7] sm:$0x1]  ;;  %v1641_v38 = vpop.permute.xlu0 %1640 }
 0x64b   :  { %v1444_v28 = vpop.f32.mrf.mxu2 }
 0x64c   :  { %v1445_v60 = vadd.f32 %v1444_v28, %v2467_v52 }
 0x64e   :  { %v1448_v53 = vmax.f32 %v1445_v60, 0.0  ;;  %v1646_v60 = vpop.permute.xlu1 %1645 }
 0x650   :  { %v1450_v9 = vmul.f32 %v1448_v53, %v2472_v63  ;;  %v1475_v63 = vld [vmem:[%s2869_s14 + $0x10] sm:$0xff] }
 0x651   :  { %1834 = vmatmul.msk.f32.gmra.mxu1 %vm103_vm0, %v1475_v63 }
 0x652   :  { %v1451_v8 = vadd.f32 %v1450_v9, %v1449_v4 }
 0x654   :  { %v1452_v54 = vrot.slane %v1451_v8, 4 }
 0x656   :  { %v1453_v11 = vadd.f32 %v1452_v54, %v1451_v8 }
 0x658   :  { %v1454_v18 = vrot.slane %v1453_v11, 2 }
 0x659   :  { %1835 = vmatmul.msk.f32.gmra.mxu1 %vm103_vm0, %v1476_v27 }
 0x65a   :  { %v1455_v52 = vadd.f32 %v1454_v18, %v1453_v11 }
 0x65c   :  { %v1456_v21 = vrot.slane %v1455_v52, 1 }
 0x65e   :  { %v1457_v24 = vadd.f32 %v1456_v21, %v1455_v52 }
 0x660   :  { %v1458_v25 = vadd.f32 %v1457_v24, %v2528_v45 }
 0x662   :  { %v1461_v31 = vmul.f32 %v1831_v62, %v1458_v25 }
 0x664   :  { %v1462_v32 = vperm.slane %v1461_v31, 0 }
 0x666   :  { %v1465_v35 = vmul.f32 %v1462_v32, %v2701_v17  ;;  %v1464_v36 = vmul.f32 %v1462_v32, %v2707_v10  ;;  %v1463_v12 = vmul.f32 %v1462_v32, %v2711_v5  ;;  %v1470_v17 = vld [vmem:[%s2870_s13 + $0x8] sm:$0xff]  ;;  %v1471_v10 = vld [vmem:[%s2870_s13 + $0x10] sm:$0xff]  ;;  %v1472_v5 = vld [vmem:[%s2870_s13 + $0x18] sm:$0xff] }
 0x668   :  { %v1468_v40 = vadd.f32 %v1465_v35, %v1315_v59  ;;  %v1467_v0 = vadd.f32 %v1464_v36, %v1314_v22  ;;  %v1466_v45 = vadd.f32 %v1463_v12, %v1313_v43  ;;  %v1571_v43 = vpop.permute.xlu2 %1570 }
 0x66a   :  { %1543 = vmatpush.msra.mxu2 %v1468_v40 }
 0x66c   :  { %1544 = vmatpush.msra.mxu2 %v1467_v0 }
 0x66e   :  { %1545 = vmatpush.msra.mxu2 %v1466_v45 }
 0x66f   :  { %1836 = vmatmul.msk.f32.vlgmr.msra.gmra.mxu2 %vm103_vm0, %v1469_v49 }
 0x670   :  { %v1603_v56 = vpop.permute.xlu2 %1602 }
 0x677   :  { %1837 = vmatmul.msk.f32.gmra.mxu2 %vm103_vm0, %v1470_v17 }
 0x678   :  { %v1661_v50 = vpop.permute.xlu2 %1660 }
 0x679   :  { %v1663_v52 = vperm.slane %v1661_v50, 0 }
 0x67f   :  { %1838 = vmatmul.msk.f32.gmra.mxu2 %vm103_vm0, %v1471_v10 }
 0x687   :  { %1839 = vmatmul.msk.f32.gmra.mxu2 %vm103_vm0, %v1472_v5 }
 0x6c2   :  { %v1509_v29 = vpop.f32.mrf.mxu1 }
 0x6ce   :  { %v1512_v1 = vpop.f32.mrf.mxu1 }
 0x6d6   :  { %v1515_v23 = vpop.f32.mrf.mxu1 }
 0x6f2   :  { %v1547_v58 = vpop.f32.mrf.mxu2 }
 0x6f3   :  { %v1548_v37 = vadd.f32 %v1547_v58, %v1506_v6 }
 0x6f5   :  { %v1583_v61 = vadd.f32 %v1566_v48, %v1548_v37 }
 0x6f7   :  { %v1587_v41 = vmax.f32 %v1583_v61, 0.0 }
 0x6fa   :  { %v1550_v44 = vpop.f32.mrf.mxu2 }
 0x6fb   :  { %v1551_v26 = vadd.f32 %v1550_v44, %v1509_v29 }
 0x6fd   :  { %v1584_v47 = vadd.f32 %v1571_v43, %v1551_v26 }
 0x6ff   :  { %v1588_v30 = vmax.f32 %v1584_v47, 0.0 }
 0x702   :  { %v1553_v42 = vpop.f32.mrf.mxu2 }
 0x703   :  { %v1554_v51 = vadd.f32 %v1553_v42, %v1512_v1 }
 0x705   :  { %v1585_v59 = vadd.f32 %v1576_v39, %v1554_v51 }
 0x707   :  { %v1589_v7 = vmax.f32 %v1585_v59, 0.0 }
 0x70a   :  { %v1556_v19 = vpop.f32.mrf.mxu2 }
 0x70b   :  { %v1557_v33 = vadd.f32 %v1556_v19, %v1515_v23 }
 0x70d   :  { %v1586_v22 = vadd.f32 %v1581_v34, %v1557_v33 }
 0x70f   :  { %v1590_v2 = vmax.f32 %v1586_v22, 0.0 }
 0x711   :  { %1623 = vmatpush.msrb.mxu0 %v1590_v2 }
 0x713   :  { %1624 = vmatpush.msrb.mxu0 %v1589_v7 }
 0x715   :  { %1625 = vmatpush.msrb.mxu0 %v1588_v30 }
 0x717   :  { %1626 = vmatpush.msrb.mxu0 %v1587_v41 }
 0x718   :  { %1840 = vmatmul.msk.f32.vlgmr.msrb.gmra.mxu0 %vm174_vm1, %v1591_v20 }
 0x720   :  { %1841 = vmatmul.msk.f32.gmra.mxu0 %vm174_vm1, %v1592_v46 }
 0x795   :  { %v1628_v55 = vpop.f32.mrf.mxu0 }
 0x796   :  { %v1629_v13 = vadd.f32 %v1628_v55, %v1598_v57 }
 0x798   :  { %v1634_v14 = vmax.f32 %v1629_v13, 0.0 }
 0x79a   :  { %v1648_v53 = vmul.f32 %v1641_v38, %v1634_v14 }
 0x79d   :  { %v1631_v3 = vpop.f32.mrf.mxu0 }
 0x79e   :  { %v1632_v16 = vadd.f32 %v1631_v3, %v1603_v56 }
 0x7a0   :  { %v1635_v28 = vmax.f32 %v1632_v16, 0.0 }
 0x7a2   :  { %v1649_v15 = vmul.f32 %v1646_v60, %v1635_v28 }
 0x7a4   :  { %v1650_v4 = vadd.f32 %v1649_v15, %v1648_v53 }
 0x7a6   :  { %v1651_v9 = vrot.slane %v1650_v4, 4 }
 0x7a8   :  { %v1652_v8 = vadd.f32 %v1651_v9, %v1650_v4 }
 0x7aa   :  { %v1653_v54 = vrot.slane %v1652_v8, 2 }
 0x7ac   :  { %v1654_v11 = vadd.f32 %v1653_v54, %v1652_v8 }
 0x7ae   :  { %v1655_v18 = vrot.slane %v1654_v11, 1 }
 0x7b0   :  { %v1656_v21 = vadd.f32 %v1655_v18, %v1654_v11 }
 0x7b2   :  { %v1664_v24 = vadd.f32 %v1663_v52, %v1656_v21 }
 0x7b4   :  { %v1842_v62 = vmul.f32 -1.442695, %v1664_v24 }
 0x7b6   :  { %1933 = vpow2.f32 %v1842_v62 }
 0x7bc   :  { %v1934_v63 = vpop.eup %1933 }
 0x7bd   :  { %v1668_v25 = vadd.f32 1.0, %v1934_v63 }
 0x7bf   :  { %1935 = vrcp.f32 %v1668_v25  ;;  %v1680_v36 = vand.u32 2147483648, %v1668_v25  ;;  %v1678_v40 = vand.u32 2147483647, %v1668_v25  ;;  %vm1674_vm3 = vweird.f32 %v1668_v25 }
 0x7c1   :  { %v1681_v0 = vor.u32 1.1754944e-38, %v1680_v36  ;;  %vm1679_vm5 = vcmp.eq.f32.partialorder %v1678_v40, 8.507059e+37 }
 0x7c5   :  { %v1936_v31 = vpop.eup %1935 }
 0x7c6   :  { %v1670_v32 = vmul.f32 %v1936_v31, %v1668_v25  ;;  %vm1675_vm2 = vweird.f32 %v1936_v31 }
 0x7c7   :  { %vm1676_vm4 = vmor %vm1674_vm3, %vm1675_vm2 }
 0x7c8   :  { %v1671_v35 = vsub.f32 1.0, %v1670_v32 }
 0x7ca   :  { %v1672_v27 = vmul.f32 %v1936_v31, %v1671_v35 }
 0x7cc   :  { %v1673_v12 = vadd.f32 %v1936_v31, %v1672_v27 }
 0x7ce   :  { %v1677_v45 = vsel %vm1676_vm4, %v1936_v31, %v1673_v12 }
 0x7cf   :  { %v1682_v49 = vsel %vm1679_vm5, %v1681_v0, %v1677_v45 }
 0x7d0   :  { %1684 = vst [vmem:[%s2872_s20] sm:$0x1] %v1682_v49 }

</bundles_post_ra>
